<compile_context>
chip_gen: v7x
topology: tpu7x:2x2x1
jax: 0.10.0
libtpu: 0.0.40
codegen_flags: <defaults>
</compile_context>

<pallas_src>
import functools

import jax
import jax.numpy as jnp
import numpy as np
from jax import lax
from jax.experimental import pallas as pl
from jax.experimental.pallas import tpu as pltpu

# Hyperparameters (defaults of BalancedTverskyFocalCELoss -> TverskyFocalCELoss)
TVERSKY_WEIGHT = 0.5
SMOOTH = 1.0
ALPHA = 0.7
BETA = 1.0 - ALPHA
GAMMA = 0.9
IGNORE_INDEX = -100   # default (negative) -> no class is ignored
# TODO(synk): a non-negative ignore_index is not honored (default -100 ignores nothing).
EPS_WEIGHT = 1e-5

NSTAT = 4          # 0: count, 1: sum(p*onehot), 2: sum(p*valid), 3: sum(nll*onehot)
MAX_TILE_S = 2048  # sublane-tile ceiling (=> up to 262144 pixels per grid step)


def _round_up(x, m):
    return ((x + m - 1) // m) * m


def _cdiv(a, b):
    return -(-a // b)


def _vmem_budget_and_limit():
    """Tile-sizing budget / scoped-VMEM limit derived from the hardware."""
    cap = None
    try:
        cap = getattr(pltpu.get_tpu_info(), "vmem_capacity_bytes", None)
    except Exception:
        cap = None
    if not cap:
        cap = 64 * 1024 * 1024                      # conservative: v7x per-core VMEM
    limit = min(int(cap * 0.65), 100 * 1024 * 1024)  # ~41MiB on v7x, ~83MiB on v5e/v6e
    budget = int(limit * 0.70)
    return budget, limit


def _choose_tile_s(n_classes, s_rows, in_itemsize, budget_bytes):
    """Largest sublane tile (multiple of 8 rows of 128 px) fitting the budget."""
    per_row = 128 * (2 * n_classes * in_itemsize    # double-buffered logits block
                     + 2 * 4                        # double-buffered int32 targets
                     + 10 * n_classes * 4)          # live f32 temporaries
    ts = max(8, (budget_bytes // per_row // 8) * 8)
    ts = min(ts, MAX_TILE_S, max(8, (s_rows // 8) * 8))
    # Balance tiles so the trailing tile is not mostly padding.
    n_tiles = _cdiv(s_rows, ts)
    ts = min(ts, _round_up(_cdiv(s_rows, n_tiles), 8))
    return int(ts)


def _stats_kernel(logits_ref, tgt_ref, out_ref, acc_ref, *,
                  hw, tile_pix, tiles_per_chunk, has_tail):
    """Accumulates per-class statistics over one (batch, chunk, pixel-tile) block.

    logits_ref: [1, C, TILE_S, 128]  raw logits (any float dtype, upcast to f32)
    tgt_ref:    [1, TILE_S, 128]     int32 class indices
    out_ref:    [1, NSTAT, C, 128]   per-(batch, chunk) lane partial sums
    acc_ref:    [NSTAT, C, 8, 128]   f32 VPU-only running partials
    """
    chunk = pl.program_id(1)
    t = pl.program_id(2)
    nt = pl.num_programs(2)

    @pl.when(t == 0)
    def _():
        acc_ref[...] = jnp.zeros(acc_ref.shape, acc_ref.dtype)

    logits = logits_ref[0].astype(jnp.float32)      # [C, TS, 128]
    tgt = tgt_ref[0]                                 # [TS, 128] int32
    C, TS, L = logits.shape
    G = TS // 8

    def reduce_rows(x):
        # [TS, L] -> [8, L]: vreg-aligned group sum, pure VPU adds (no XLU).
        return x.reshape(G, 8, L).sum(axis=0)

    def accumulate(zl, valid):
        # Softmax over the class axis as a static loop of element-wise ops on
        # [TS, 128] planes (pixels on sublanes -> full vreg occupancy).
        m = zl[0]
        for c in range(1, C):
            m = jnp.maximum(m, zl[c])
        e = [jnp.exp(zl[c] - m) for c in range(C)]
        s = e[0]
        for c in range(1, C):
            s = s + e[c]
        inv_s = pl.reciprocal(s, approx=True)        # EUP vrcp, ~2^-12 rel. error
        lse = jnp.log(s) + m                         # per-pixel logsumexp

        for c in range(C):
            onehot = tgt == c                        # bool mask, no f32 onehot
            if valid is not None:
                onehot = onehot & valid
            p = e[c] * inv_s
            p_v = p if valid is None else jnp.where(valid, p, 0.0)
            nll = lse - zl[c]                        # -log softmax_c (used where tgt==c)
            acc_ref[0, c] += reduce_rows(jnp.where(onehot, 1.0, 0.0))
            acc_ref[1, c] += reduce_rows(jnp.where(onehot, p, 0.0))
            acc_ref[2, c] += reduce_rows(p_v)
            acc_ref[3, c] += reduce_rows(jnp.where(onehot, nll, 0.0))

    g = chunk * tiles_per_chunk + t                  # global pixel-tile index

    if has_tail:
        needs_mask = (g + 1) * tile_pix > hw

        @pl.when(jnp.logical_not(needs_mask))
        def _():                                     # full-tile fast path (no masking)
            accumulate(logits, None)

        @pl.when(needs_mask)
        def _():                                     # ragged-tail / padded-tile path
            row = lax.broadcasted_iota(jnp.int32, (TS, L), 0)
            lane = lax.broadcasted_iota(jnp.int32, (TS, L), 1)
            valid = (g * tile_pix + row * L + lane) < hw
            zl = jnp.where(valid[None], logits, 0.0)  # keep garbage out of exp
            accumulate(zl, valid)
    else:
        accumulate(logits, None)

    @pl.when(t == nt - 1)
    def _():
        # Fold the 8-sublane group axis once per (batch, chunk); lane-dense store.
        for st in range(NSTAT):
            out_ref[0, st] = jnp.sum(acc_ref[st], axis=1)


def balanced_tversky_focal_ce_loss(predict, target, *, tile_s=None):
    """predict: [N, C, H, W] float logits (bf16 preferred); target: [N, H, W] int labels."""
    N, C, H, W = predict.shape
    HW = H * W
    numel = N * HW

    # Native layout, free reshapes (no transpose, no f32 materialization).
    logits = predict.reshape(N, C, HW)
    tgt = target.reshape(N, HW).astype(jnp.int32)

    # Pixels-on-sublane view needs HW % 128 == 0 and at least 8 rows; pad only
    # in the rare non-conforming case (padded pixels are masked in-kernel).
    HW_pad = max(_round_up(HW, 128), 1024)
    if HW_pad != HW:
        logits = jnp.pad(logits, ((0, 0), (0, 0), (0, HW_pad - HW)))
        tgt = jnp.pad(tgt, ((0, 0), (0, HW_pad - HW)))
    S = HW_pad // 128
    logits4 = logits.reshape(N, C, S, 128)
    tgt3 = tgt.reshape(N, S, 128)

    budget, vmem_limit = _vmem_budget_and_limit()
    if tile_s is None:
        tile_s = _choose_tile_s(C, S, predict.dtype.itemsize, budget)
    assert tile_s % 8 == 0
    tile_pix = tile_s * 128
    T_total = _cdiv(S, tile_s)

    # Odd-N megacore help (v7x): split the pixel-tile axis into 2 parallel chunks.
    P = 2 if (N % 2 == 1 and T_total >= 2 and T_total % 2 == 0) else 1
    Tc = T_total // P
    has_tail = (T_total * tile_pix != HW)

    kernel = functools.partial(_stats_kernel, hw=HW, tile_pix=tile_pix,
                               tiles_per_chunk=Tc, has_tail=has_tail)

    stats = pl.pallas_call(
        kernel,
        out_shape=jax.ShapeDtypeStruct((N * P, NSTAT, C, 128), jnp.float32),
        grid_spec=pltpu.PrefetchScalarGridSpec(
            num_scalar_prefetch=0,
            grid=(N, P, Tc),
            in_specs=[
                pl.BlockSpec((1, C, tile_s, 128),
                             lambda n, p, t: (n, 0, p * Tc + t, 0)),
                pl.BlockSpec((1, tile_s, 128),
                             lambda n, p, t: (n, p * Tc + t, 0)),
            ],
            out_specs=pl.BlockSpec((1, NSTAT, C, 128),
                                   lambda n, p, t: (n * P + p, 0, 0, 0)),
            scratch_shapes=[pltpu.VMEM((NSTAT, C, 8, 128), jnp.float32)],
        ),
        compiler_params=pltpu.CompilerParams(
            dimension_semantics=("parallel", "parallel", "arbitrary"),
            vmem_limit_bytes=vmem_limit,
        ),
    )(logits4, tgt3)

    # ---- tiny O(C) epilogue in plain JAX ----
    # NOTE: statistics accumulate in f32 (counts exact up to ~2^24 px/class).
    per_class = jnp.sum(stats, axis=(0, 3))          # [NSTAT, C]
    counts, sum_pt, sum_pv, nll_pc = (per_class[0], per_class[1],
                                      per_class[2], per_class[3])
    sum_1mp_t = counts - sum_pt                       # sum((1-p)*t)
    sum_p_1mt = sum_pv - sum_pt                       # sum(p*(1-t))

    # Inverse-label-frequency weights (classes absent from target keep 1e-5).
    present = counts > 0
    ratio = counts / float(numel)
    inv = jnp.where(present, 1.0 / jnp.where(present, ratio, 1.0), 0.0)
    w_norm = inv / jnp.sum(inv)
    loss_weight = jnp.where(present, w_norm, EPS_WEIGHT)

    # Per-class focal Tversky loss, weighted sum over classes.
    num = sum_pt + SMOOTH
    den = sum_pt + ALPHA * sum_1mp_t + BETA * sum_p_1mt + SMOOTH
    tv_per_class = jnp.power(1.0 - num / den, 1.0 / GAMMA)
    tversky_loss = jnp.sum(loss_weight * tv_per_class)

    # Weighted cross entropy (PyTorch "mean" = weighted mean over pixels).
    ce_loss = jnp.sum(loss_weight * nll_pc) / jnp.sum(loss_weight * counts)

    return TVERSKY_WEIGHT * tversky_loss + (1.0 - TVERSKY_WEIGHT) * ce_loss


def reference_loss(predict, target):
    """Pure-JAX reference of the PyTorch forward pass (for verification)."""
    N, C, H, W = predict.shape
    numel = target.size
    onehot = jax.nn.one_hot(target, C, axis=1)          # [N, C, H, W]
    p = jax.nn.softmax(predict, axis=1)

    counts = jnp.sum(onehot, axis=(0, 2, 3))
    present = counts > 0
    ratio = counts / numel
    inv = jnp.where(present, 1.0 / jnp.where(present, ratio, 1.0), 0.0)
    w = inv / jnp.sum(inv)
    loss_weight = jnp.where(present, w, EPS_WEIGHT)

    pt = jnp.sum(p * onehot, axis=(0, 2, 3))
    t1 = jnp.sum((1.0 - p) * onehot, axis=(0, 2, 3))
    t2 = jnp.sum(p * (1.0 - onehot), axis=(0, 2, 3))
    num = pt + SMOOTH
    den = pt + ALPHA * t1 + BETA * t2 + SMOOTH
    tv = jnp.power(1.0 - num / den, 1.0 / GAMMA)
    tversky = jnp.sum(loss_weight * tv)

    logp = jax.nn.log_softmax(predict, axis=1)
    nll = -jnp.sum(logp * onehot, axis=1)               # [N, H, W]
    wmap = loss_weight[target]
    ce = jnp.sum(wmap * nll) / jnp.sum(wmap)

    return TVERSKY_WEIGHT * tversky + (1.0 - TVERSKY_WEIGHT) * ce


if __name__ == "__main__":
    key = jax.random.PRNGKey(0)
    k1, k2 = jax.random.split(key)

    # Required small example (exercises the masked-tail path, HW < 1024).
    predict = jax.random.normal(k1, (2, 4, 16, 16), dtype=jnp.float32)
    target = jax.random.randint(k2, (2, 16, 16), 0, 4, dtype=jnp.int32)
    loss = jax.block_until_ready(balanced_tversky_focal_ce_loss(predict, target))
    ref = reference_loss(predict, target)
    np.testing.assert_allclose(np.asarray(loss), np.asarray(ref),
                               rtol=2e-3, atol=1e-6)

    # bf16 calling convention + odd-N parallel pixel-chunk + multi-tile fast path.
    k3, k4 = jax.random.split(k2)
    p2 = jax.random.normal(k3, (1, 5, 64, 64), dtype=jnp.bfloat16)
    t2 = jax.random.randint(k4, (1, 64, 64), 0, 5, dtype=jnp.int32)
    l2 = jax.block_until_ready(balanced_tversky_focal_ce_loss(p2, t2, tile_s=8))
    r2 = reference_loss(p2.astype(jnp.float32), t2)
    np.testing.assert_allclose(np.asarray(l2), np.asarray(r2),
                               rtol=2e-3, atol=1e-5)

    # HW not a multiple of 128 (host pad + in-kernel validity mask).
    k5, k6 = jax.random.split(k4)
    p3 = jax.random.normal(k5, (2, 3, 20, 20), dtype=jnp.float32)
    t3 = jax.random.randint(k6, (2, 20, 20), 0, 3, dtype=jnp.int32)
    l3 = jax.block_until_ready(balanced_tversky_focal_ce_loss(p3, t3))
    r3 = reference_loss(p3, t3)
    np.testing.assert_allclose(np.asarray(l3), np.asarray(r3),
                               rtol=2e-3, atol=1e-6)

    print("KERNEL_OK")
</pallas_src>

<mosaic_0001>
module attributes {stable_mosaic.version = 11 : i64} {
  func.func @_stats_kernel(%arg0: i32, %arg1: i32, %arg2: i32, %arg3: memref<1x4x8x128xf32, #tpu.memory_space<vmem>>, %arg4: memref<1x8x128xi32, #tpu.memory_space<vmem>>, %arg5: memref<1x4x4x128xf32, #tpu.memory_space<vmem>>, %arg6: memref<4x4x8x128xf32, #tpu.memory_space<vmem>>) attributes {dimension_semantics = [#tpu.dimension_semantics<parallel>, #tpu.dimension_semantics<parallel>, #tpu.dimension_semantics<arbitrary>], iteration_bounds = array<i64: 2, 1, 1>, scalar_prefetch = 0 : i64, scratch_operands = 1 : i64, tpu.core_type = #tpu.core_type<tc>, window_params = [{transform_indices = @transform_0, window_bounds = array<i64: 1, 4, 8, 128>}, {transform_indices = @transform_1, window_bounds = array<i64: 1, 8, 128>}, {transform_indices = @transform_2, window_bounds = array<i64: 1, 4, 4, 128>}]} {
    %c0_i32 = arith.constant 0 : i32
    %0 = arith.cmpi eq, %arg2, %c0_i32 : i32
    %1 = arith.extui %0 : i1 to i32
    %c0_i32_0 = arith.constant 0 : i32
    %2 = arith.cmpi ne, %1, %c0_i32_0 : i32
    scf.if %2 {
      %cst = arith.constant 0.000000e+00 : f32
      %20 = vector.broadcast %cst : f32 to vector<4x4x8x128xf32>
      %c0_12 = arith.constant 0 : index
      %c0_13 = arith.constant 0 : index
      %c0_14 = arith.constant 0 : index
      %c0_15 = arith.constant 0 : index
      %21 = vector.load %arg6[%c0_12, %c0_13, %c0_14, %c0_15] : memref<4x4x8x128xf32, #tpu.memory_space<vmem>>, vector<4x4x8x128xf32>
      tpu.vector_store %arg6[%c0_12, %c0_13, %c0_14, %c0_15], %20 {strides = array<i32>} : memref<4x4x8x128xf32, #tpu.memory_space<vmem>>, vector<4x4x8x128xf32>,
    } else {
    }
    %c0 = arith.constant 0 : index
    %c0_1 = arith.constant 0 : index
    %c0_2 = arith.constant 0 : index
    %c0_3 = arith.constant 0 : index
    %3 = vector.load %arg3[%c0, %c0_1, %c0_2, %c0_3] : memref<1x4x8x128xf32, #tpu.memory_space<vmem>>, vector<1x4x8x128xf32>
    %4 = vector.shape_cast %3 : vector<1x4x8x128xf32> to vector<4x8x128xf32>
    %c0_4 = arith.constant 0 : index
    %c0_5 = arith.constant 0 : index
    %c0_6 = arith.constant 0 : index
    %5 = vector.load %arg4[%c0_4, %c0_5, %c0_6] : memref<1x8x128xi32, #tpu.memory_space<vmem>>, vector<1x8x128xi32>
    %6 = vector.shape_cast %5 : vector<1x8x128xi32> to vector<8x128xi32>
    %c1_i32 = arith.constant 1 : i32
    %7 = arith.muli %arg1, %c1_i32 : i32
    %8 = arith.addi %7, %arg2 : i32
    %c1_i32_7 = arith.constant 1 : i32
    %9 = arith.addi %8, %c1_i32_7 : i32
    %c1024_i32 = arith.constant 1024 : i32
    %10 = arith.muli %9, %c1024_i32 : i32
    %c256_i32 = arith.constant 256 : i32
    %11 = arith.cmpi sgt, %10, %c256_i32 : i32
    %true = arith.constant true
    %12 = arith.xori %11, %true : i1
    %13 = arith.extui %12 : i1 to i32
    %c0_i32_8 = arith.constant 0 : i32
    %14 = arith.cmpi ne, %13, %c0_i32_8 : i32
    scf.if %14 {
      %20 = vector.extract_strided_slice %4 {offsets = [0, 0, 0], sizes = [1, 8, 128], strides = [1, 1, 1]} : vector<4x8x128xf32> to vector<1x8x128xf32>
      %21 = vector.shape_cast %20 : vector<1x8x128xf32> to vector<8x128xf32>
      %22 = vector.extract_strided_slice %4 {offsets = [1, 0, 0], sizes = [1, 8, 128], strides = [1, 1, 1]} : vector<4x8x128xf32> to vector<1x8x128xf32>
      %23 = vector.shape_cast %22 : vector<1x8x128xf32> to vector<8x128xf32>
      %24 = arith.maximumf %21, %23 : vector<8x128xf32>
      %25 = vector.extract_strided_slice %4 {offsets = [2, 0, 0], sizes = [1, 8, 128], strides = [1, 1, 1]} : vector<4x8x128xf32> to vector<1x8x128xf32>
      %26 = vector.shape_cast %25 : vector<1x8x128xf32> to vector<8x128xf32>
      %27 = arith.maximumf %24, %26 : vector<8x128xf32>
      %28 = vector.extract_strided_slice %4 {offsets = [3, 0, 0], sizes = [1, 8, 128], strides = [1, 1, 1]} : vector<4x8x128xf32> to vector<1x8x128xf32>
      %29 = vector.shape_cast %28 : vector<1x8x128xf32> to vector<8x128xf32>
      %30 = arith.maximumf %27, %29 : vector<8x128xf32>
      %31 = vector.extract_strided_slice %4 {offsets = [0, 0, 0], sizes = [1, 8, 128], strides = [1, 1, 1]} : vector<4x8x128xf32> to vector<1x8x128xf32>
      %32 = vector.shape_cast %31 : vector<1x8x128xf32> to vector<8x128xf32>
      %33 = arith.subf %32, %30 : vector<8x128xf32>
      %34 = math.exp %33 : vector<8x128xf32>
      %35 = vector.extract_strided_slice %4 {offsets = [1, 0, 0], sizes = [1, 8, 128], strides = [1, 1, 1]} : vector<4x8x128xf32> to vector<1x8x128xf32>
      %36 = vector.shape_cast %35 : vector<1x8x128xf32> to vector<8x128xf32>
      %37 = arith.subf %36, %30 : vector<8x128xf32>
      %38 = math.exp %37 : vector<8x128xf32>
      %39 = vector.extract_strided_slice %4 {offsets = [2, 0, 0], sizes = [1, 8, 128], strides = [1, 1, 1]} : vector<4x8x128xf32> to vector<1x8x128xf32>
      %40 = vector.shape_cast %39 : vector<1x8x128xf32> to vector<8x128xf32>
      %41 = arith.subf %40, %30 : vector<8x128xf32>
      %42 = math.exp %41 : vector<8x128xf32>
      %43 = vector.extract_strided_slice %4 {offsets = [3, 0, 0], sizes = [1, 8, 128], strides = [1, 1, 1]} : vector<4x8x128xf32> to vector<1x8x128xf32>
      %44 = vector.shape_cast %43 : vector<1x8x128xf32> to vector<8x128xf32>
      %45 = arith.subf %44, %30 : vector<8x128xf32>
      %46 = math.exp %45 : vector<8x128xf32>
      %47 = arith.addf %34, %38 : vector<8x128xf32>
      %48 = arith.addf %47, %42 : vector<8x128xf32>
      %49 = arith.addf %48, %46 : vector<8x128xf32>
      %50 = tpu.reciprocal %49 {approx = true} : vector<8x128xf32> -> vector<8x128xf32>
      %51 = math.log %49 : vector<8x128xf32>
      %52 = arith.addf %51, %30 : vector<8x128xf32>
      %c0_i32_12 = arith.constant 0 : i32
      %53 = vector.broadcast %c0_i32_12 : i32 to vector<8x128xi32>
      %54 = arith.cmpi eq, %6, %53 : vector<8x128xi32>
      %55 = arith.mulf %34, %50 : vector<8x128xf32>
      %56 = vector.extract_strided_slice %4 {offsets = [0, 0, 0], sizes = [1, 8, 128], strides = [1, 1, 1]} : vector<4x8x128xf32> to vector<1x8x128xf32>
      %57 = vector.shape_cast %56 : vector<1x8x128xf32> to vector<8x128xf32>
      %58 = arith.subf %52, %57 : vector<8x128xf32>
      %c0_13 = arith.constant 0 : index
      %c0_14 = arith.constant 0 : index
      %c0_15 = arith.constant 0 : index
      %c0_16 = arith.constant 0 : index
      %59 = vector.load %arg6[%c0_13, %c0_14, %c0_15, %c0_16] : memref<4x4x8x128xf32, #tpu.memory_space<vmem>>, vector<1x1x8x128xf32>
      %60 = vector.shape_cast %59 : vector<1x1x8x128xf32> to vector<8x128xf32>
      %cst = arith.constant 1.000000e+00 : f32
      %cst_17 = arith.constant 0.000000e+00 : f32
      %61 = vector.broadcast %cst : f32 to vector<8x128xf32>
      %62 = vector.broadcast %cst_17 : f32 to vector<8x128xf32>
      %63 = arith.select %54, %61, %62 : vector<8x128xi1>, vector<8x128xf32>
      %64 = vector.shape_cast %63 : vector<8x128xf32> to vector<1x8x128xf32>
      %cst_18 = arith.constant dense<0.000000e+00> : vector<8x128xf32>
      %65 = vector.multi_reduction <add>, %64, %cst_18 [0] : vector<1x8x128xf32> to vector<8x128xf32>
      %66 = arith.addf %60, %65 : vector<8x128xf32>
      %c0_19 = arith.constant 0 : index
      %c0_20 = arith.constant 0 : index
      %c0_21 = arith.constant 0 : index
      %c0_22 = arith.constant 0 : index
      %67 = vector.load %arg6[%c0_19, %c0_20, %c0_21, %c0_22] : memref<4x4x8x128xf32, #tpu.memory_space<vmem>>, vector<1x1x8x128xf32>
      %68 = vector.shape_cast %67 : vector<1x1x8x128xf32> to vector<8x128xf32>
      %69 = vector.shape_cast %66 : vector<8x128xf32> to vector<1x1x8x128xf32>
      tpu.vector_store %arg6[%c0_19, %c0_20, %c0_21, %c0_22], %69 {strides = array<i32>} : memref<4x4x8x128xf32, #tpu.memory_space<vmem>>, vector<1x1x8x128xf32>,
      %c1 = arith.constant 1 : index
      %c0_23 = arith.constant 0 : index
      %c0_24 = arith.constant 0 : index
      %c0_25 = arith.constant 0 : index
      %70 = vector.load %arg6[%c1, %c0_23, %c0_24, %c0_25] : memref<4x4x8x128xf32, #tpu.memory_space<vmem>>, vector<1x1x8x128xf32>
      %71 = vector.shape_cast %70 : vector<1x1x8x128xf32> to vector<8x128xf32>
      %cst_26 = arith.constant 0.000000e+00 : f32
      %72 = vector.broadcast %cst_26 : f32 to vector<8x128xf32>
      %73 = arith.select %54, %55, %72 : vector<8x128xi1>, vector<8x128xf32>
      %74 = vector.shape_cast %73 : vector<8x128xf32> to vector<1x8x128xf32>
      %cst_27 = arith.constant dense<0.000000e+00> : vector<8x128xf32>
      %75 = vector.multi_reduction <add>, %74, %cst_27 [0] : vector<1x8x128xf32> to vector<8x128xf32>
      %76 = arith.addf %71, %75 : vector<8x128xf32>
      %c1_28 = arith.constant 1 : index
      %c0_29 = arith.constant 0 : index
      %c0_30 = arith.constant 0 : index
      %c0_31 = arith.constant 0 : index
      %77 = vector.load %arg6[%c1_28, %c0_29, %c0_30, %c0_31] : memref<4x4x8x128xf32, #tpu.memory_space<vmem>>, vector<1x1x8x128xf32>
      %78 = vector.shape_cast %77 : vector<1x1x8x128xf32> to vector<8x128xf32>
      %79 = vector.shape_cast %76 : vector<8x128xf32> to vector<1x1x8x128xf32>
      tpu.vector_store %arg6[%c1_28, %c0_29, %c0_30, %c0_31], %79 {strides = array<i32>} : memref<4x4x8x128xf32, #tpu.memory_space<vmem>>, vector<1x1x8x128xf32>,
      %c2 = arith.constant 2 : index
      %c0_32 = arith.constant 0 : index
      %c0_33 = arith.constant 0 : index
      %c0_34 = arith.constant 0 : index
      %80 = vector.load %arg6[%c2, %c0_32, %c0_33, %c0_34] : memref<4x4x8x128xf32, #tpu.memory_space<vmem>>, vector<1x1x8x128xf32>
      %81 = vector.shape_cast %80 : vector<1x1x8x128xf32> to vector<8x128xf32>
      %82 = vector.shape_cast %55 : vector<8x128xf32> to vector<1x8x128xf32>
      %cst_35 = arith.constant dense<0.000000e+00> : vector<8x128xf32>
      %83 = vector.multi_reduction <add>, %82, %cst_35 [0] : vector<1x8x128xf32> to vector<8x128xf32>
      %84 = arith.addf %81, %83 : vector<8x128xf32>
      %c2_36 = arith.constant 2 : index
      %c0_37 = arith.constant 0 : index
      %c0_38 = arith.constant 0 : index
      %c0_39 = arith.constant 0 : index
      %85 = vector.load %arg6[%c2_36, %c0_37, %c0_38, %c0_39] : memref<4x4x8x128xf32, #tpu.memory_space<vmem>>, vector<1x1x8x128xf32>
      %86 = vector.shape_cast %85 : vector<1x1x8x128xf32> to vector<8x128xf32>
      %87 = vector.shape_cast %84 : vector<8x128xf32> to vector<1x1x8x128xf32>
      tpu.vector_store %arg6[%c2_36, %c0_37, %c0_38, %c0_39], %87 {strides = array<i32>} : memref<4x4x8x128xf32, #tpu.memory_space<vmem>>, vector<1x1x8x128xf32>,
      %c3 = arith.constant 3 : index
      %c0_40 = arith.constant 0 : index
      %c0_41 = arith.constant 0 : index
      %c0_42 = arith.constant 0 : index
      %88 = vector.load %arg6[%c3, %c0_40, %c0_41, %c0_42] : memref<4x4x8x128xf32, #tpu.memory_space<vmem>>, vector<1x1x8x128xf32>
      %89 = vector.shape_cast %88 : vector<1x1x8x128xf32> to vector<8x128xf32>
      %cst_43 = arith.constant 0.000000e+00 : f32
      %90 = vector.broadcast %cst_43 : f32 to vector<8x128xf32>
      %91 = arith.select %54, %58, %90 : vector<8x128xi1>, vector<8x128xf32>
      %92 = vector.shape_cast %91 : vector<8x128xf32> to vector<1x8x128xf32>
      %cst_44 = arith.constant dense<0.000000e+00> : vector<8x128xf32>
      %93 = vector.multi_reduction <add>, %92, %cst_44 [0] : vector<1x8x128xf32> to vector<8x128xf32>
      %94 = arith.addf %89, %93 : vector<8x128xf32>
      %c3_45 = arith.constant 3 : index
      %c0_46 = arith.constant 0 : index
      %c0_47 = arith.constant 0 : index
      %c0_48 = arith.constant 0 : index
      %95 = vector.load %arg6[%c3_45, %c0_46, %c0_47, %c0_48] : memref<4x4x8x128xf32, #tpu.memory_space<vmem>>, vector<1x1x8x128xf32>
      %96 = vector.shape_cast %95 : vector<1x1x8x128xf32> to vector<8x128xf32>
      %97 = vector.shape_cast %94 : vector<8x128xf32> to vector<1x1x8x128xf32>
      tpu.vector_store %arg6[%c3_45, %c0_46, %c0_47, %c0_48], %97 {strides = array<i32>} : memref<4x4x8x128xf32, #tpu.memory_space<vmem>>, vector<1x1x8x128xf32>,
      %c1_i32_49 = arith.constant 1 : i32
      %98 = vector.broadcast %c1_i32_49 : i32 to vector<8x128xi32>
      %99 = arith.cmpi eq, %6, %98 : vector<8x128xi32>
      %100 = arith.mulf %38, %50 : vector<8x128xf32>
      %101 = vector.extract_strided_slice %4 {offsets = [1, 0, 0], sizes = [1, 8, 128], strides = [1, 1, 1]} : vector<4x8x128xf32> to vector<1x8x128xf32>
      %102 = vector.shape_cast %101 : vector<1x8x128xf32> to vector<8x128xf32>
      %103 = arith.subf %52, %102 : vector<8x128xf32>
      %c0_50 = arith.constant 0 : index
      %c1_51 = arith.constant 1 : index
      %c0_52 = arith.constant 0 : index
      %c0_53 = arith.constant 0 : index
      %104 = vector.load %arg6[%c0_50, %c1_51, %c0_52, %c0_53] : memref<4x4x8x128xf32, #tpu.memory_space<vmem>>, vector<1x1x8x128xf32>
      %105 = vector.shape_cast %104 : vector<1x1x8x128xf32> to vector<8x128xf32>
      %cst_54 = arith.constant 1.000000e+00 : f32
      %cst_55 = arith.constant 0.000000e+00 : f32
      %106 = vector.broadcast %cst_54 : f32 to vector<8x128xf32>
      %107 = vector.broadcast %cst_55 : f32 to vector<8x128xf32>
      %108 = arith.select %99, %106, %107 : vector<8x128xi1>, vector<8x128xf32>
      %109 = vector.shape_cast %108 : vector<8x128xf32> to vector<1x8x128xf32>
      %cst_56 = arith.constant dense<0.000000e+00> : vector<8x128xf32>
      %110 = vector.multi_reduction <add>, %109, %cst_56 [0] : vector<1x8x128xf32> to vector<8x128xf32>
      %111 = arith.addf %105, %110 : vector<8x128xf32>
      %c0_57 = arith.constant 0 : index
      %c1_58 = arith.constant 1 : index
      %c0_59 = arith.constant 0 : index
      %c0_60 = arith.constant 0 : index
      %112 = vector.load %arg6[%c0_57, %c1_58, %c0_59, %c0_60] : memref<4x4x8x128xf32, #tpu.memory_space<vmem>>, vector<1x1x8x128xf32>
      %113 = vector.shape_cast %112 : vector<1x1x8x128xf32> to vector<8x128xf32>
      %114 = vector.shape_cast %111 : vector<8x128xf32> to vector<1x1x8x128xf32>
      tpu.vector_store %arg6[%c0_57, %c1_58, %c0_59, %c0_60], %114 {strides = array<i32>} : memref<4x4x8x128xf32, #tpu.memory_space<vmem>>, vector<1x1x8x128xf32>,
      %c1_61 = arith.constant 1 : index
      %c1_62 = arith.constant 1 : index
      %c0_63 = arith.constant 0 : index
      %c0_64 = arith.constant 0 : index
      %115 = vector.load %arg6[%c1_61, %c1_62, %c0_63, %c0_64] : memref<4x4x8x128xf32, #tpu.memory_space<vmem>>, vector<1x1x8x128xf32>
      %116 = vector.shape_cast %115 : vector<1x1x8x128xf32> to vector<8x128xf32>
      %cst_65 = arith.constant 0.000000e+00 : f32
      %117 = vector.broadcast %cst_65 : f32 to vector<8x128xf32>
      %118 = arith.select %99, %100, %117 : vector<8x128xi1>, vector<8x128xf32>
      %119 = vector.shape_cast %118 : vector<8x128xf32> to vector<1x8x128xf32>
      %cst_66 = arith.constant dense<0.000000e+00> : vector<8x128xf32>
      %120 = vector.multi_reduction <add>, %119, %cst_66 [0] : vector<1x8x128xf32> to vector<8x128xf32>
      %121 = arith.addf %116, %120 : vector<8x128xf32>
      %c1_67 = arith.constant 1 : index
      %c1_68 = arith.constant 1 : index
      %c0_69 = arith.constant 0 : index
      %c0_70 = arith.constant 0 : index
      %122 = vector.load %arg6[%c1_67, %c1_68, %c0_69, %c0_70] : memref<4x4x8x128xf32, #tpu.memory_space<vmem>>, vector<1x1x8x128xf32>
      %123 = vector.shape_cast %122 : vector<1x1x8x128xf32> to vector<8x128xf32>
      %124 = vector.shape_cast %121 : vector<8x128xf32> to vector<1x1x8x128xf32>
      tpu.vector_store %arg6[%c1_67, %c1_68, %c0_69, %c0_70], %124 {strides = array<i32>} : memref<4x4x8x128xf32, #tpu.memory_space<vmem>>, vector<1x1x8x128xf32>,
      %c2_71 = arith.constant 2 : index
      %c1_72 = arith.constant 1 : index
      %c0_73 = arith.constant 0 : index
      %c0_74 = arith.constant 0 : index
      %125 = vector.load %arg6[%c2_71, %c1_72, %c0_73, %c0_74] : memref<4x4x8x128xf32, #tpu.memory_space<vmem>>, vector<1x1x8x128xf32>
      %126 = vector.shape_cast %125 : vector<1x1x8x128xf32> to vector<8x128xf32>
      %127 = vector.shape_cast %100 : vector<8x128xf32> to vector<1x8x128xf32>
      %cst_75 = arith.constant dense<0.000000e+00> : vector<8x128xf32>
      %128 = vector.multi_reduction <add>, %127, %cst_75 [0] : vector<1x8x128xf32> to vector<8x128xf32>
      %129 = arith.addf %126, %128 : vector<8x128xf32>
      %c2_76 = arith.constant 2 : index
      %c1_77 = arith.constant 1 : index
      %c0_78 = arith.constant 0 : index
      %c0_79 = arith.constant 0 : index
      %130 = vector.load %arg6[%c2_76, %c1_77, %c0_78, %c0_79] : memref<4x4x8x128xf32, #tpu.memory_space<vmem>>, vector<1x1x8x128xf32>
      %131 = vector.shape_cast %130 : vector<1x1x8x128xf32> to vector<8x128xf32>
      %132 = vector.shape_cast %129 : vector<8x128xf32> to vector<1x1x8x128xf32>
      tpu.vector_store %arg6[%c2_76, %c1_77, %c0_78, %c0_79], %132 {strides = array<i32>} : memref<4x4x8x128xf32, #tpu.memory_space<vmem>>, vector<1x1x8x128xf32>,
      %c3_80 = arith.constant 3 : index
      %c1_81 = arith.constant 1 : index
      %c0_82 = arith.constant 0 : index
      %c0_83 = arith.constant 0 : index
      %133 = vector.load %arg6[%c3_80, %c1_81, %c0_82, %c0_83] : memref<4x4x8x128xf32, #tpu.memory_space<vmem>>, vector<1x1x8x128xf32>
      %134 = vector.shape_cast %133 : vector<1x1x8x128xf32> to vector<8x128xf32>
      %cst_84 = arith.constant 0.000000e+00 : f32
      %135 = vector.broadcast %cst_84 : f32 to vector<8x128xf32>
      %136 = arith.select %99, %103, %135 : vector<8x128xi1>, vector<8x128xf32>
      %137 = vector.shape_cast %136 : vector<8x128xf32> to vector<1x8x128xf32>
      %cst_85 = arith.constant dense<0.000000e+00> : vector<8x128xf32>
      %138 = vector.multi_reduction <add>, %137, %cst_85 [0] : vector<1x8x128xf32> to vector<8x128xf32>
      %139 = arith.addf %134, %138 : vector<8x128xf32>
      %c3_86 = arith.constant 3 : index
      %c1_87 = arith.constant 1 : index
      %c0_88 = arith.constant 0 : index
      %c0_89 = arith.constant 0 : index
      %140 = vector.load %arg6[%c3_86, %c1_87, %c0_88, %c0_89] : memref<4x4x8x128xf32, #tpu.memory_space<vmem>>, vector<1x1x8x128xf32>
      %141 = vector.shape_cast %140 : vector<1x1x8x128xf32> to vector<8x128xf32>
      %142 = vector.shape_cast %139 : vector<8x128xf32> to vector<1x1x8x128xf32>
      tpu.vector_store %arg6[%c3_86, %c1_87, %c0_88, %c0_89], %142 {strides = array<i32>} : memref<4x4x8x128xf32, #tpu.memory_space<vmem>>, vector<1x1x8x128xf32>,
      %c2_i32 = arith.constant 2 : i32
      %143 = vector.broadcast %c2_i32 : i32 to vector<8x128xi32>
      %144 = arith.cmpi eq, %6, %143 : vector<8x128xi32>
      %145 = arith.mulf %42, %50 : vector<8x128xf32>
      %146 = vector.extract_strided_slice %4 {offsets = [2, 0, 0], sizes = [1, 8, 128], strides = [1, 1, 1]} : vector<4x8x128xf32> to vector<1x8x128xf32>
      %147 = vector.shape_cast %146 : vector<1x8x128xf32> to vector<8x128xf32>
      %148 = arith.subf %52, %147 : vector<8x128xf32>
      %c0_90 = arith.constant 0 : index
      %c2_91 = arith.constant 2 : index
      %c0_92 = arith.constant 0 : index
      %c0_93 = arith.constant 0 : index
      %149 = vector.load %arg6[%c0_90, %c2_91, %c0_92, %c0_93] : memref<4x4x8x128xf32, #tpu.memory_space<vmem>>, vector<1x1x8x128xf32>
      %150 = vector.shape_cast %149 : vector<1x1x8x128xf32> to vector<8x128xf32>
      %cst_94 = arith.constant 1.000000e+00 : f32
      %cst_95 = arith.constant 0.000000e+00 : f32
      %151 = vector.broadcast %cst_94 : f32 to vector<8x128xf32>
      %152 = vector.broadcast %cst_95 : f32 to vector<8x128xf32>
      %153 = arith.select %144, %151, %152 : vector<8x128xi1>, vector<8x128xf32>
      %154 = vector.shape_cast %153 : vector<8x128xf32> to vector<1x8x128xf32>
      %cst_96 = arith.constant dense<0.000000e+00> : vector<8x128xf32>
      %155 = vector.multi_reduction <add>, %154, %cst_96 [0] : vector<1x8x128xf32> to vector<8x128xf32>
      %156 = arith.addf %150, %155 : vector<8x128xf32>
      %c0_97 = arith.constant 0 : index
      %c2_98 = arith.constant 2 : index
      %c0_99 = arith.constant 0 : index
      %c0_100 = arith.constant 0 : index
      %157 = vector.load %arg6[%c0_97, %c2_98, %c0_99, %c0_100] : memref<4x4x8x128xf32, #tpu.memory_space<vmem>>, vector<1x1x8x128xf32>
      %158 = vector.shape_cast %157 : vector<1x1x8x128xf32> to vector<8x128xf32>
      %159 = vector.shape_cast %156 : vector<8x128xf32> to vector<1x1x8x128xf32>
      tpu.vector_store %arg6[%c0_97, %c2_98, %c0_99, %c0_100], %159 {strides = array<i32>} : memref<4x4x8x128xf32, #tpu.memory_space<vmem>>, vector<1x1x8x128xf32>,
      %c1_101 = arith.constant 1 : index
      %c2_102 = arith.constant 2 : index
      %c0_103 = arith.constant 0 : index
      %c0_104 = arith.constant 0 : index
      %160 = vector.load %arg6[%c1_101, %c2_102, %c0_103, %c0_104] : memref<4x4x8x128xf32, #tpu.memory_space<vmem>>, vector<1x1x8x128xf32>
      %161 = vector.shape_cast %160 : vector<1x1x8x128xf32> to vector<8x128xf32>
      %cst_105 = arith.constant 0.000000e+00 : f32
      %162 = vector.broadcast %cst_105 : f32 to vector<8x128xf32>
      %163 = arith.select %144, %145, %162 : vector<8x128xi1>, vector<8x128xf32>
      %164 = vector.shape_cast %163 : vector<8x128xf32> to vector<1x8x128xf32>
      %cst_106 = arith.constant dense<0.000000e+00> : vector<8x128xf32>
      %165 = vector.multi_reduction <add>, %164, %cst_106 [0] : vector<1x8x128xf32> to vector<8x128xf32>
      %166 = arith.addf %161, %165 : vector<8x128xf32>
      %c1_107 = arith.constant 1 : index
      %c2_108 = arith.constant 2 : index
      %c0_109 = arith.constant 0 : index
      %c0_110 = arith.constant 0 : index
      %167 = vector.load %arg6[%c1_107, %c2_108, %c0_109, %c0_110] : memref<4x4x8x128xf32, #tpu.memory_space<vmem>>, vector<1x1x8x128xf32>
      %168 = vector.shape_cast %167 : vector<1x1x8x128xf32> to vector<8x128xf32>
      %169 = vector.shape_cast %166 : vector<8x128xf32> to vector<1x1x8x128xf32>
      tpu.vector_store %arg6[%c1_107, %c2_108, %c0_109, %c0_110], %169 {strides = array<i32>} : memref<4x4x8x128xf32, #tpu.memory_space<vmem>>, vector<1x1x8x128xf32>,
      %c2_111 = arith.constant 2 : index
      %c2_112 = arith.constant 2 : index
      %c0_113 = arith.constant 0 : index
      %c0_114 = arith.constant 0 : index
      %170 = vector.load %arg6[%c2_111, %c2_112, %c0_113, %c0_114] : memref<4x4x8x128xf32, #tpu.memory_space<vmem>>, vector<1x1x8x128xf32>
      %171 = vector.shape_cast %170 : vector<1x1x8x128xf32> to vector<8x128xf32>
      %172 = vector.shape_cast %145 : vector<8x128xf32> to vector<1x8x128xf32>
      %cst_115 = arith.constant dense<0.000000e+00> : vector<8x128xf32>
      %173 = vector.multi_reduction <add>, %172, %cst_115 [0] : vector<1x8x128xf32> to vector<8x128xf32>
      %174 = arith.addf %171, %173 : vector<8x128xf32>
      %c2_116 = arith.constant 2 : index
      %c2_117 = arith.constant 2 : index
      %c0_118 = arith.constant 0 : index
      %c0_119 = arith.constant 0 : index
      %175 = vector.load %arg6[%c2_116, %c2_117, %c0_118, %c0_119] : memref<4x4x8x128xf32, #tpu.memory_space<vmem>>, vector<1x1x8x128xf32>
      %176 = vector.shape_cast %175 : vector<1x1x8x128xf32> to vector<8x128xf32>
      %177 = vector.shape_cast %174 : vector<8x128xf32> to vector<1x1x8x128xf32>
      tpu.vector_store %arg6[%c2_116, %c2_117, %c0_118, %c0_119], %177 {strides = array<i32>} : memref<4x4x8x128xf32, #tpu.memory_space<vmem>>, vector<1x1x8x128xf32>,
      %c3_120 = arith.constant 3 : index
      %c2_121 = arith.constant 2 : index
      %c0_122 = arith.constant 0 : index
      %c0_123 = arith.constant 0 : index
      %178 = vector.load %arg6[%c3_120, %c2_121, %c0_122, %c0_123] : memref<4x4x8x128xf32, #tpu.memory_space<vmem>>, vector<1x1x8x128xf32>
      %179 = vector.shape_cast %178 : vector<1x1x8x128xf32> to vector<8x128xf32>
      %cst_124 = arith.constant 0.000000e+00 : f32
      %180 = vector.broadcast %cst_124 : f32 to vector<8x128xf32>
      %181 = arith.select %144, %148, %180 : vector<8x128xi1>, vector<8x128xf32>
      %182 = vector.shape_cast %181 : vector<8x128xf32> to vector<1x8x128xf32>
      %cst_125 = arith.constant dense<0.000000e+00> : vector<8x128xf32>
      %183 = vector.multi_reduction <add>, %182, %cst_125 [0] : vector<1x8x128xf32> to vector<8x128xf32>
      %184 = arith.addf %179, %183 : vector<8x128xf32>
      %c3_126 = arith.constant 3 : index
      %c2_127 = arith.constant 2 : index
      %c0_128 = arith.constant 0 : index
      %c0_129 = arith.constant 0 : index
      %185 = vector.load %arg6[%c3_126, %c2_127, %c0_128, %c0_129] : memref<4x4x8x128xf32, #tpu.memory_space<vmem>>, vector<1x1x8x128xf32>
      %186 = vector.shape_cast %185 : vector<1x1x8x128xf32> to vector<8x128xf32>
      %187 = vector.shape_cast %184 : vector<8x128xf32> to vector<1x1x8x128xf32>
      tpu.vector_store %arg6[%c3_126, %c2_127, %c0_128, %c0_129], %187 {strides = array<i32>} : memref<4x4x8x128xf32, #tpu.memory_space<vmem>>, vector<1x1x8x128xf32>,
      %c3_i32 = arith.constant 3 : i32
      %188 = vector.broadcast %c3_i32 : i32 to vector<8x128xi32>
      %189 = arith.cmpi eq, %6, %188 : vector<8x128xi32>
      %190 = arith.mulf %46, %50 : vector<8x128xf32>
      %191 = vector.extract_strided_slice %4 {offsets = [3, 0, 0], sizes = [1, 8, 128], strides = [1, 1, 1]} : vector<4x8x128xf32> to vector<1x8x128xf32>
      %192 = vector.shape_cast %191 : vector<1x8x128xf32> to vector<8x128xf32>
      %193 = arith.subf %52, %192 : vector<8x128xf32>
      %c0_130 = arith.constant 0 : index
      %c3_131 = arith.constant 3 : index
      %c0_132 = arith.constant 0 : index
      %c0_133 = arith.constant 0 : index
      %194 = vector.load %arg6[%c0_130, %c3_131, %c0_132, %c0_133] : memref<4x4x8x128xf32, #tpu.memory_space<vmem>>, vector<1x1x8x128xf32>
      %195 = vector.shape_cast %194 : vector<1x1x8x128xf32> to vector<8x128xf32>
      %cst_134 = arith.constant 1.000000e+00 : f32
      %cst_135 = arith.constant 0.000000e+00 : f32
      %196 = vector.broadcast %cst_134 : f32 to vector<8x128xf32>
      %197 = vector.broadcast %cst_135 : f32 to vector<8x128xf32>
      %198 = arith.select %189, %196, %197 : vector<8x128xi1>, vector<8x128xf32>
      %199 = vector.shape_cast %198 : vector<8x128xf32> to vector<1x8x128xf32>
      %cst_136 = arith.constant dense<0.000000e+00> : vector<8x128xf32>
      %200 = vector.multi_reduction <add>, %199, %cst_136 [0] : vector<1x8x128xf32> to vector<8x128xf32>
      %201 = arith.addf %195, %200 : vector<8x128xf32>
      %c0_137 = arith.constant 0 : index
      %c3_138 = arith.constant 3 : index
      %c0_139 = arith.constant 0 : index
      %c0_140 = arith.constant 0 : index
      %202 = vector.load %arg6[%c0_137, %c3_138, %c0_139, %c0_140] : memref<4x4x8x128xf32, #tpu.memory_space<vmem>>, vector<1x1x8x128xf32>
      %203 = vector.shape_cast %202 : vector<1x1x8x128xf32> to vector<8x128xf32>
      %204 = vector.shape_cast %201 : vector<8x128xf32> to vector<1x1x8x128xf32>
      tpu.vector_store %arg6[%c0_137, %c3_138, %c0_139, %c0_140], %204 {strides = array<i32>} : memref<4x4x8x128xf32, #tpu.memory_space<vmem>>, vector<1x1x8x128xf32>,
      %c1_141 = arith.constant 1 : index
      %c3_142 = arith.constant 3 : index
      %c0_143 = arith.constant 0 : index
      %c0_144 = arith.constant 0 : index
      %205 = vector.load %arg6[%c1_141, %c3_142, %c0_143, %c0_144] : memref<4x4x8x128xf32, #tpu.memory_space<vmem>>, vector<1x1x8x128xf32>
      %206 = vector.shape_cast %205 : vector<1x1x8x128xf32> to vector<8x128xf32>
      %cst_145 = arith.constant 0.000000e+00 : f32
      %207 = vector.broadcast %cst_145 : f32 to vector<8x128xf32>
      %208 = arith.select %189, %190, %207 : vector<8x128xi1>, vector<8x128xf32>
      %209 = vector.shape_cast %208 : vector<8x128xf32> to vector<1x8x128xf32>
      %cst_146 = arith.constant dense<0.000000e+00> : vector<8x128xf32>
      %210 = vector.multi_reduction <add>, %209, %cst_146 [0] : vector<1x8x128xf32> to vector<8x128xf32>
      %211 = arith.addf %206, %210 : vector<8x128xf32>
      %c1_147 = arith.constant 1 : index
      %c3_148 = arith.constant 3 : index
      %c0_149 = arith.constant 0 : index
      %c0_150 = arith.constant 0 : index
      %212 = vector.load %arg6[%c1_147, %c3_148, %c0_149, %c0_150] : memref<4x4x8x128xf32, #tpu.memory_space<vmem>>, vector<1x1x8x128xf32>
      %213 = vector.shape_cast %212 : vector<1x1x8x128xf32> to vector<8x128xf32>
      %214 = vector.shape_cast %211 : vector<8x128xf32> to vector<1x1x8x128xf32>
      tpu.vector_store %arg6[%c1_147, %c3_148, %c0_149, %c0_150], %214 {strides = array<i32>} : memref<4x4x8x128xf32, #tpu.memory_space<vmem>>, vector<1x1x8x128xf32>,
      %c2_151 = arith.constant 2 : index
      %c3_152 = arith.constant 3 : index
      %c0_153 = arith.constant 0 : index
      %c0_154 = arith.constant 0 : index
      %215 = vector.load %arg6[%c2_151, %c3_152, %c0_153, %c0_154] : memref<4x4x8x128xf32, #tpu.memory_space<vmem>>, vector<1x1x8x128xf32>
      %216 = vector.shape_cast %215 : vector<1x1x8x128xf32> to vector<8x128xf32>
      %217 = vector.shape_cast %190 : vector<8x128xf32> to vector<1x8x128xf32>
      %cst_155 = arith.constant dense<0.000000e+00> : vector<8x128xf32>
      %218 = vector.multi_reduction <add>, %217, %cst_155 [0] : vector<1x8x128xf32> to vector<8x128xf32>
      %219 = arith.addf %216, %218 : vector<8x128xf32>
      %c2_156 = arith.constant 2 : index
      %c3_157 = arith.constant 3 : index
      %c0_158 = arith.constant 0 : index
      %c0_159 = arith.constant 0 : index
      %220 = vector.load %arg6[%c2_156, %c3_157, %c0_158, %c0_159] : memref<4x4x8x128xf32, #tpu.memory_space<vmem>>, vector<1x1x8x128xf32>
      %221 = vector.shape_cast %220 : vector<1x1x8x128xf32> to vector<8x128xf32>
      %222 = vector.shape_cast %219 : vector<8x128xf32> to vector<1x1x8x128xf32>
      tpu.vector_store %arg6[%c2_156, %c3_157, %c0_158, %c0_159], %222 {strides = array<i32>} : memref<4x4x8x128xf32, #tpu.memory_space<vmem>>, vector<1x1x8x128xf32>,
      %c3_160 = arith.constant 3 : index
      %c3_161 = arith.constant 3 : index
      %c0_162 = arith.constant 0 : index
      %c0_163 = arith.constant 0 : index
      %223 = vector.load %arg6[%c3_160, %c3_161, %c0_162, %c0_163] : memref<4x4x8x128xf32, #tpu.memory_space<vmem>>, vector<1x1x8x128xf32>
      %224 = vector.shape_cast %223 : vector<1x1x8x128xf32> to vector<8x128xf32>
      %cst_164 = arith.constant 0.000000e+00 : f32
      %225 = vector.broadcast %cst_164 : f32 to vector<8x128xf32>
      %226 = arith.select %189, %193, %225 : vector<8x128xi1>, vector<8x128xf32>
      %227 = vector.shape_cast %226 : vector<8x128xf32> to vector<1x8x128xf32>
      %cst_165 = arith.constant dense<0.000000e+00> : vector<8x128xf32>
      %228 = vector.multi_reduction <add>, %227, %cst_165 [0] : vector<1x8x128xf32> to vector<8x128xf32>
      %229 = arith.addf %224, %228 : vector<8x128xf32>
      %c3_166 = arith.constant 3 : index
      %c3_167 = arith.constant 3 : index
      %c0_168 = arith.constant 0 : index
      %c0_169 = arith.constant 0 : index
      %230 = vector.load %arg6[%c3_166, %c3_167, %c0_168, %c0_169] : memref<4x4x8x128xf32, #tpu.memory_space<vmem>>, vector<1x1x8x128xf32>
      %231 = vector.shape_cast %230 : vector<1x1x8x128xf32> to vector<8x128xf32>
      %232 = vector.shape_cast %229 : vector<8x128xf32> to vector<1x1x8x128xf32>
      tpu.vector_store %arg6[%c3_166, %c3_167, %c0_168, %c0_169], %232 {strides = array<i32>} : memref<4x4x8x128xf32, #tpu.memory_space<vmem>>, vector<1x1x8x128xf32>,
    } else {
    }
    %15 = arith.extui %11 : i1 to i32
    %c0_i32_9 = arith.constant 0 : i32
    %16 = arith.cmpi ne, %15, %c0_i32_9 : i32
    scf.if %16 {
      %20 = tpu.iota {dimensions = array<i32: 0>} : vector<8x128xi32>
      %21 = tpu.iota {dimensions = array<i32: 1>} : vector<8x128xi32>
      %c1024_i32_12 = arith.constant 1024 : i32
      %22 = arith.muli %8, %c1024_i32_12 : i32
      %c128_i32 = arith.constant 128 : i32
      %23 = vector.broadcast %c128_i32 : i32 to vector<8x128xi32>
      %24 = arith.muli %20, %23 : vector<8x128xi32>
      %25 = vector.broadcast %22 : i32 to vector<8x128xi32>
      %26 = arith.addi %25, %24 : vector<8x128xi32>
      %27 = arith.addi %26, %21 : vector<8x128xi32>
      %c256_i32_13 = arith.constant 256 : i32
      %28 = vector.broadcast %c256_i32_13 : i32 to vector<8x128xi32>
      %29 = arith.cmpi slt, %27, %28 : vector<8x128xi32>
      %30 = vector.shape_cast %29 : vector<8x128xi1> to vector<1x8x128xi1>
      %cst = arith.constant 0.000000e+00 : f32
      %31 = vector.shape_cast %30 : vector<1x8x128xi1> to vector<1x8x128xi1>
      %32 = vector.broadcast %31 : vector<1x8x128xi1> to vector<4x8x128xi1>
      %33 = vector.broadcast %cst : f32 to vector<4x8x128xf32>
      %34 = arith.select %32, %4, %33 : vector<4x8x128xi1>, vector<4x8x128xf32>
      %35 = vector.extract_strided_slice %34 {offsets = [0, 0, 0], sizes = [1, 8, 128], strides = [1, 1, 1]} : vector<4x8x128xf32> to vector<1x8x128xf32>
      %36 = vector.shape_cast %35 : vector<1x8x128xf32> to vector<8x128xf32>
      %37 = vector.extract_strided_slice %34 {offsets = [1, 0, 0], sizes = [1, 8, 128], strides = [1, 1, 1]} : vector<4x8x128xf32> to vector<1x8x128xf32>
      %38 = vector.shape_cast %37 : vector<1x8x128xf32> to vector<8x128xf32>
      %39 = arith.maximumf %36, %38 : vector<8x128xf32>
      %40 = vector.extract_strided_slice %34 {offsets = [2, 0, 0], sizes = [1, 8, 128], strides = [1, 1, 1]} : vector<4x8x128xf32> to vector<1x8x128xf32>
      %41 = vector.shape_cast %40 : vector<1x8x128xf32> to vector<8x128xf32>
      %42 = arith.maximumf %39, %41 : vector<8x128xf32>
      %43 = vector.extract_strided_slice %34 {offsets = [3, 0, 0], sizes = [1, 8, 128], strides = [1, 1, 1]} : vector<4x8x128xf32> to vector<1x8x128xf32>
      %44 = vector.shape_cast %43 : vector<1x8x128xf32> to vector<8x128xf32>
      %45 = arith.maximumf %42, %44 : vector<8x128xf32>
      %46 = vector.extract_strided_slice %34 {offsets = [0, 0, 0], sizes = [1, 8, 128], strides = [1, 1, 1]} : vector<4x8x128xf32> to vector<1x8x128xf32>
      %47 = vector.shape_cast %46 : vector<1x8x128xf32> to vector<8x128xf32>
      %48 = arith.subf %47, %45 : vector<8x128xf32>
      %49 = math.exp %48 : vector<8x128xf32>
      %50 = vector.extract_strided_slice %34 {offsets = [1, 0, 0], sizes = [1, 8, 128], strides = [1, 1, 1]} : vector<4x8x128xf32> to vector<1x8x128xf32>
      %51 = vector.shape_cast %50 : vector<1x8x128xf32> to vector<8x128xf32>
      %52 = arith.subf %51, %45 : vector<8x128xf32>
      %53 = math.exp %52 : vector<8x128xf32>
      %54 = vector.extract_strided_slice %34 {offsets = [2, 0, 0], sizes = [1, 8, 128], strides = [1, 1, 1]} : vector<4x8x128xf32> to vector<1x8x128xf32>
      %55 = vector.shape_cast %54 : vector<1x8x128xf32> to vector<8x128xf32>
      %56 = arith.subf %55, %45 : vector<8x128xf32>
      %57 = math.exp %56 : vector<8x128xf32>
      %58 = vector.extract_strided_slice %34 {offsets = [3, 0, 0], sizes = [1, 8, 128], strides = [1, 1, 1]} : vector<4x8x128xf32> to vector<1x8x128xf32>
      %59 = vector.shape_cast %58 : vector<1x8x128xf32> to vector<8x128xf32>
      %60 = arith.subf %59, %45 : vector<8x128xf32>
      %61 = math.exp %60 : vector<8x128xf32>
      %62 = arith.addf %49, %53 : vector<8x128xf32>
      %63 = arith.addf %62, %57 : vector<8x128xf32>
      %64 = arith.addf %63, %61 : vector<8x128xf32>
      %65 = tpu.reciprocal %64 {approx = true} : vector<8x128xf32> -> vector<8x128xf32>
      %66 = math.log %64 : vector<8x128xf32>
      %67 = arith.addf %66, %45 : vector<8x128xf32>
      %c0_i32_14 = arith.constant 0 : i32
      %68 = vector.broadcast %c0_i32_14 : i32 to vector<8x128xi32>
      %69 = arith.cmpi eq, %6, %68 : vector<8x128xi32>
      %70 = arith.andi %69, %29 : vector<8x128xi1>
      %71 = arith.mulf %49, %65 : vector<8x128xf32>
      %cst_15 = arith.constant 0.000000e+00 : f32
      %72 = vector.broadcast %cst_15 : f32 to vector<8x128xf32>
      %73 = arith.select %29, %71, %72 : vector<8x128xi1>, vector<8x128xf32>
      %74 = vector.extract_strided_slice %34 {offsets = [0, 0, 0], sizes = [1, 8, 128], strides = [1, 1, 1]} : vector<4x8x128xf32> to vector<1x8x128xf32>
      %75 = vector.shape_cast %74 : vector<1x8x128xf32> to vector<8x128xf32>
      %76 = arith.subf %67, %75 : vector<8x128xf32>
      %c0_16 = arith.constant 0 : index
      %c0_17 = arith.constant 0 : index
      %c0_18 = arith.constant 0 : index
      %c0_19 = arith.constant 0 : index
      %77 = vector.load %arg6[%c0_16, %c0_17, %c0_18, %c0_19] : memref<4x4x8x128xf32, #tpu.memory_space<vmem>>, vector<1x1x8x128xf32>
      %78 = vector.shape_cast %77 : vector<1x1x8x128xf32> to vector<8x128xf32>
      %cst_20 = arith.constant 1.000000e+00 : f32
      %cst_21 = arith.constant 0.000000e+00 : f32
      %79 = vector.broadcast %cst_20 : f32 to vector<8x128xf32>
      %80 = vector.broadcast %cst_21 : f32 to vector<8x128xf32>
      %81 = arith.select %70, %79, %80 : vector<8x128xi1>, vector<8x128xf32>
      %82 = vector.shape_cast %81 : vector<8x128xf32> to vector<1x8x128xf32>
      %cst_22 = arith.constant dense<0.000000e+00> : vector<8x128xf32>
      %83 = vector.multi_reduction <add>, %82, %cst_22 [0] : vector<1x8x128xf32> to vector<8x128xf32>
      %84 = arith.addf %78, %83 : vector<8x128xf32>
      %c0_23 = arith.constant 0 : index
      %c0_24 = arith.constant 0 : index
      %c0_25 = arith.constant 0 : index
      %c0_26 = arith.constant 0 : index
      %85 = vector.load %arg6[%c0_23, %c0_24, %c0_25, %c0_26] : memref<4x4x8x128xf32, #tpu.memory_space<vmem>>, vector<1x1x8x128xf32>
      %86 = vector.shape_cast %85 : vector<1x1x8x128xf32> to vector<8x128xf32>
      %87 = vector.shape_cast %84 : vector<8x128xf32> to vector<1x1x8x128xf32>
      tpu.vector_store %arg6[%c0_23, %c0_24, %c0_25, %c0_26], %87 {strides = array<i32>} : memref<4x4x8x128xf32, #tpu.memory_space<vmem>>, vector<1x1x8x128xf32>,
      %c1 = arith.constant 1 : index
      %c0_27 = arith.constant 0 : index
      %c0_28 = arith.constant 0 : index
      %c0_29 = arith.constant 0 : index
      %88 = vector.load %arg6[%c1, %c0_27, %c0_28, %c0_29] : memref<4x4x8x128xf32, #tpu.memory_space<vmem>>, vector<1x1x8x128xf32>
      %89 = vector.shape_cast %88 : vector<1x1x8x128xf32> to vector<8x128xf32>
      %cst_30 = arith.constant 0.000000e+00 : f32
      %90 = vector.broadcast %cst_30 : f32 to vector<8x128xf32>
      %91 = arith.select %70, %71, %90 : vector<8x128xi1>, vector<8x128xf32>
      %92 = vector.shape_cast %91 : vector<8x128xf32> to vector<1x8x128xf32>
      %cst_31 = arith.constant dense<0.000000e+00> : vector<8x128xf32>
      %93 = vector.multi_reduction <add>, %92, %cst_31 [0] : vector<1x8x128xf32> to vector<8x128xf32>
      %94 = arith.addf %89, %93 : vector<8x128xf32>
      %c1_32 = arith.constant 1 : index
      %c0_33 = arith.constant 0 : index
      %c0_34 = arith.constant 0 : index
      %c0_35 = arith.constant 0 : index
      %95 = vector.load %arg6[%c1_32, %c0_33, %c0_34, %c0_35] : memref<4x4x8x128xf32, #tpu.memory_space<vmem>>, vector<1x1x8x128xf32>
      %96 = vector.shape_cast %95 : vector<1x1x8x128xf32> to vector<8x128xf32>
      %97 = vector.shape_cast %94 : vector<8x128xf32> to vector<1x1x8x128xf32>
      tpu.vector_store %arg6[%c1_32, %c0_33, %c0_34, %c0_35], %97 {strides = array<i32>} : memref<4x4x8x128xf32, #tpu.memory_space<vmem>>, vector<1x1x8x128xf32>,
      %c2 = arith.constant 2 : index
      %c0_36 = arith.constant 0 : index
      %c0_37 = arith.constant 0 : index
      %c0_38 = arith.constant 0 : index
      %98 = vector.load %arg6[%c2, %c0_36, %c0_37, %c0_38] : memref<4x4x8x128xf32, #tpu.memory_space<vmem>>, vector<1x1x8x128xf32>
      %99 = vector.shape_cast %98 : vector<1x1x8x128xf32> to vector<8x128xf32>
      %100 = vector.shape_cast %73 : vector<8x128xf32> to vector<1x8x128xf32>
      %cst_39 = arith.constant dense<0.000000e+00> : vector<8x128xf32>
      %101 = vector.multi_reduction <add>, %100, %cst_39 [0] : vector<1x8x128xf32> to vector<8x128xf32>
      %102 = arith.addf %99, %101 : vector<8x128xf32>
      %c2_40 = arith.constant 2 : index
      %c0_41 = arith.constant 0 : index
      %c0_42 = arith.constant 0 : index
      %c0_43 = arith.constant 0 : index
      %103 = vector.load %arg6[%c2_40, %c0_41, %c0_42, %c0_43] : memref<4x4x8x128xf32, #tpu.memory_space<vmem>>, vector<1x1x8x128xf32>
      %104 = vector.shape_cast %103 : vector<1x1x8x128xf32> to vector<8x128xf32>
      %105 = vector.shape_cast %102 : vector<8x128xf32> to vector<1x1x8x128xf32>
      tpu.vector_store %arg6[%c2_40, %c0_41, %c0_42, %c0_43], %105 {strides = array<i32>} : memref<4x4x8x128xf32, #tpu.memory_space<vmem>>, vector<1x1x8x128xf32>,
      %c3 = arith.constant 3 : index
      %c0_44 = arith.constant 0 : index
      %c0_45 = arith.constant 0 : index
      %c0_46 = arith.constant 0 : index
      %106 = vector.load %arg6[%c3, %c0_44, %c0_45, %c0_46] : memref<4x4x8x128xf32, #tpu.memory_space<vmem>>, vector<1x1x8x128xf32>
      %107 = vector.shape_cast %106 : vector<1x1x8x128xf32> to vector<8x128xf32>
      %cst_47 = arith.constant 0.000000e+00 : f32
      %108 = vector.broadcast %cst_47 : f32 to vector<8x128xf32>
      %109 = arith.select %70, %76, %108 : vector<8x128xi1>, vector<8x128xf32>
      %110 = vector.shape_cast %109 : vector<8x128xf32> to vector<1x8x128xf32>
      %cst_48 = arith.constant dense<0.000000e+00> : vector<8x128xf32>
      %111 = vector.multi_reduction <add>, %110, %cst_48 [0] : vector<1x8x128xf32> to vector<8x128xf32>
      %112 = arith.addf %107, %111 : vector<8x128xf32>
      %c3_49 = arith.constant 3 : index
      %c0_50 = arith.constant 0 : index
      %c0_51 = arith.constant 0 : index
      %c0_52 = arith.constant 0 : index
      %113 = vector.load %arg6[%c3_49, %c0_50, %c0_51, %c0_52] : memref<4x4x8x128xf32, #tpu.memory_space<vmem>>, vector<1x1x8x128xf32>
      %114 = vector.shape_cast %113 : vector<1x1x8x128xf32> to vector<8x128xf32>
      %115 = vector.shape_cast %112 : vector<8x128xf32> to vector<1x1x8x128xf32>
      tpu.vector_store %arg6[%c3_49, %c0_50, %c0_51, %c0_52], %115 {strides = array<i32>} : memref<4x4x8x128xf32, #tpu.memory_space<vmem>>, vector<1x1x8x128xf32>,
      %c1_i32_53 = arith.constant 1 : i32
      %116 = vector.broadcast %c1_i32_53 : i32 to vector<8x128xi32>
      %117 = arith.cmpi eq, %6, %116 : vector<8x128xi32>
      %118 = arith.andi %117, %29 : vector<8x128xi1>
      %119 = arith.mulf %53, %65 : vector<8x128xf32>
      %cst_54 = arith.constant 0.000000e+00 : f32
      %120 = vector.broadcast %cst_54 : f32 to vector<8x128xf32>
      %121 = arith.select %29, %119, %120 : vector<8x128xi1>, vector<8x128xf32>
      %122 = vector.extract_strided_slice %34 {offsets = [1, 0, 0], sizes = [1, 8, 128], strides = [1, 1, 1]} : vector<4x8x128xf32> to vector<1x8x128xf32>
      %123 = vector.shape_cast %122 : vector<1x8x128xf32> to vector<8x128xf32>
      %124 = arith.subf %67, %123 : vector<8x128xf32>
      %c0_55 = arith.constant 0 : index
      %c1_56 = arith.constant 1 : index
      %c0_57 = arith.constant 0 : index
      %c0_58 = arith.constant 0 : index
      %125 = vector.load %arg6[%c0_55, %c1_56, %c0_57, %c0_58] : memref<4x4x8x128xf32, #tpu.memory_space<vmem>>, vector<1x1x8x128xf32>
      %126 = vector.shape_cast %125 : vector<1x1x8x128xf32> to vector<8x128xf32>
      %cst_59 = arith.constant 1.000000e+00 : f32
      %cst_60 = arith.constant 0.000000e+00 : f32
      %127 = vector.broadcast %cst_59 : f32 to vector<8x128xf32>
      %128 = vector.broadcast %cst_60 : f32 to vector<8x128xf32>
      %129 = arith.select %118, %127, %128 : vector<8x128xi1>, vector<8x128xf32>
      %130 = vector.shape_cast %129 : vector<8x128xf32> to vector<1x8x128xf32>
      %cst_61 = arith.constant dense<0.000000e+00> : vector<8x128xf32>
      %131 = vector.multi_reduction <add>, %130, %cst_61 [0] : vector<1x8x128xf32> to vector<8x128xf32>
      %132 = arith.addf %126, %131 : vector<8x128xf32>
      %c0_62 = arith.constant 0 : index
      %c1_63 = arith.constant 1 : index
      %c0_64 = arith.constant 0 : index
      %c0_65 = arith.constant 0 : index
      %133 = vector.load %arg6[%c0_62, %c1_63, %c0_64, %c0_65] : memref<4x4x8x128xf32, #tpu.memory_space<vmem>>, vector<1x1x8x128xf32>
      %134 = vector.shape_cast %133 : vector<1x1x8x128xf32> to vector<8x128xf32>
      %135 = vector.shape_cast %132 : vector<8x128xf32> to vector<1x1x8x128xf32>
      tpu.vector_store %arg6[%c0_62, %c1_63, %c0_64, %c0_65], %135 {strides = array<i32>} : memref<4x4x8x128xf32, #tpu.memory_space<vmem>>, vector<1x1x8x128xf32>,
      %c1_66 = arith.constant 1 : index
      %c1_67 = arith.constant 1 : index
      %c0_68 = arith.constant 0 : index
      %c0_69 = arith.constant 0 : index
      %136 = vector.load %arg6[%c1_66, %c1_67, %c0_68, %c0_69] : memref<4x4x8x128xf32, #tpu.memory_space<vmem>>, vector<1x1x8x128xf32>
      %137 = vector.shape_cast %136 : vector<1x1x8x128xf32> to vector<8x128xf32>
      %cst_70 = arith.constant 0.000000e+00 : f32
      %138 = vector.broadcast %cst_70 : f32 to vector<8x128xf32>
      %139 = arith.select %118, %119, %138 : vector<8x128xi1>, vector<8x128xf32>
      %140 = vector.shape_cast %139 : vector<8x128xf32> to vector<1x8x128xf32>
      %cst_71 = arith.constant dense<0.000000e+00> : vector<8x128xf32>
      %141 = vector.multi_reduction <add>, %140, %cst_71 [0] : vector<1x8x128xf32> to vector<8x128xf32>
      %142 = arith.addf %137, %141 : vector<8x128xf32>
      %c1_72 = arith.constant 1 : index
      %c1_73 = arith.constant 1 : index
      %c0_74 = arith.constant 0 : index
      %c0_75 = arith.constant 0 : index
      %143 = vector.load %arg6[%c1_72, %c1_73, %c0_74, %c0_75] : memref<4x4x8x128xf32, #tpu.memory_space<vmem>>, vector<1x1x8x128xf32>
      %144 = vector.shape_cast %143 : vector<1x1x8x128xf32> to vector<8x128xf32>
      %145 = vector.shape_cast %142 : vector<8x128xf32> to vector<1x1x8x128xf32>
      tpu.vector_store %arg6[%c1_72, %c1_73, %c0_74, %c0_75], %145 {strides = array<i32>} : memref<4x4x8x128xf32, #tpu.memory_space<vmem>>, vector<1x1x8x128xf32>,
      %c2_76 = arith.constant 2 : index
      %c1_77 = arith.constant 1 : index
      %c0_78 = arith.constant 0 : index
      %c0_79 = arith.constant 0 : index
      %146 = vector.load %arg6[%c2_76, %c1_77, %c0_78, %c0_79] : memref<4x4x8x128xf32, #tpu.memory_space<vmem>>, vector<1x1x8x128xf32>
      %147 = vector.shape_cast %146 : vector<1x1x8x128xf32> to vector<8x128xf32>
      %148 = vector.shape_cast %121 : vector<8x128xf32> to vector<1x8x128xf32>
      %cst_80 = arith.constant dense<0.000000e+00> : vector<8x128xf32>
      %149 = vector.multi_reduction <add>, %148, %cst_80 [0] : vector<1x8x128xf32> to vector<8x128xf32>
      %150 = arith.addf %147, %149 : vector<8x128xf32>
      %c2_81 = arith.constant 2 : index
      %c1_82 = arith.constant 1 : index
      %c0_83 = arith.constant 0 : index
      %c0_84 = arith.constant 0 : index
      %151 = vector.load %arg6[%c2_81, %c1_82, %c0_83, %c0_84] : memref<4x4x8x128xf32, #tpu.memory_space<vmem>>, vector<1x1x8x128xf32>
      %152 = vector.shape_cast %151 : vector<1x1x8x128xf32> to vector<8x128xf32>
      %153 = vector.shape_cast %150 : vector<8x128xf32> to vector<1x1x8x128xf32>
      tpu.vector_store %arg6[%c2_81, %c1_82, %c0_83, %c0_84], %153 {strides = array<i32>} : memref<4x4x8x128xf32, #tpu.memory_space<vmem>>, vector<1x1x8x128xf32>,
      %c3_85 = arith.constant 3 : index
      %c1_86 = arith.constant 1 : index
      %c0_87 = arith.constant 0 : index
      %c0_88 = arith.constant 0 : index
      %154 = vector.load %arg6[%c3_85, %c1_86, %c0_87, %c0_88] : memref<4x4x8x128xf32, #tpu.memory_space<vmem>>, vector<1x1x8x128xf32>
      %155 = vector.shape_cast %154 : vector<1x1x8x128xf32> to vector<8x128xf32>
      %cst_89 = arith.constant 0.000000e+00 : f32
      %156 = vector.broadcast %cst_89 : f32 to vector<8x128xf32>
      %157 = arith.select %118, %124, %156 : vector<8x128xi1>, vector<8x128xf32>
      %158 = vector.shape_cast %157 : vector<8x128xf32> to vector<1x8x128xf32>
      %cst_90 = arith.constant dense<0.000000e+00> : vector<8x128xf32>
      %159 = vector.multi_reduction <add>, %158, %cst_90 [0] : vector<1x8x128xf32> to vector<8x128xf32>
      %160 = arith.addf %155, %159 : vector<8x128xf32>
      %c3_91 = arith.constant 3 : index
      %c1_92 = arith.constant 1 : index
      %c0_93 = arith.constant 0 : index
      %c0_94 = arith.constant 0 : index
      %161 = vector.load %arg6[%c3_91, %c1_92, %c0_93, %c0_94] : memref<4x4x8x128xf32, #tpu.memory_space<vmem>>, vector<1x1x8x128xf32>
      %162 = vector.shape_cast %161 : vector<1x1x8x128xf32> to vector<8x128xf32>
      %163 = vector.shape_cast %160 : vector<8x128xf32> to vector<1x1x8x128xf32>
      tpu.vector_store %arg6[%c3_91, %c1_92, %c0_93, %c0_94], %163 {strides = array<i32>} : memref<4x4x8x128xf32, #tpu.memory_space<vmem>>, vector<1x1x8x128xf32>,
      %c2_i32 = arith.constant 2 : i32
      %164 = vector.broadcast %c2_i32 : i32 to vector<8x128xi32>
      %165 = arith.cmpi eq, %6, %164 : vector<8x128xi32>
      %166 = arith.andi %165, %29 : vector<8x128xi1>
      %167 = arith.mulf %57, %65 : vector<8x128xf32>
      %cst_95 = arith.constant 0.000000e+00 : f32
      %168 = vector.broadcast %cst_95 : f32 to vector<8x128xf32>
      %169 = arith.select %29, %167, %168 : vector<8x128xi1>, vector<8x128xf32>
      %170 = vector.extract_strided_slice %34 {offsets = [2, 0, 0], sizes = [1, 8, 128], strides = [1, 1, 1]} : vector<4x8x128xf32> to vector<1x8x128xf32>
      %171 = vector.shape_cast %170 : vector<1x8x128xf32> to vector<8x128xf32>
      %172 = arith.subf %67, %171 : vector<8x128xf32>
      %c0_96 = arith.constant 0 : index
      %c2_97 = arith.constant 2 : index
      %c0_98 = arith.constant 0 : index
      %c0_99 = arith.constant 0 : index
      %173 = vector.load %arg6[%c0_96, %c2_97, %c0_98, %c0_99] : memref<4x4x8x128xf32, #tpu.memory_space<vmem>>, vector<1x1x8x128xf32>
      %174 = vector.shape_cast %173 : vector<1x1x8x128xf32> to vector<8x128xf32>
      %cst_100 = arith.constant 1.000000e+00 : f32
      %cst_101 = arith.constant 0.000000e+00 : f32
      %175 = vector.broadcast %cst_100 : f32 to vector<8x128xf32>
      %176 = vector.broadcast %cst_101 : f32 to vector<8x128xf32>
      %177 = arith.select %166, %175, %176 : vector<8x128xi1>, vector<8x128xf32>
      %178 = vector.shape_cast %177 : vector<8x128xf32> to vector<1x8x128xf32>
      %cst_102 = arith.constant dense<0.000000e+00> : vector<8x128xf32>
      %179 = vector.multi_reduction <add>, %178, %cst_102 [0] : vector<1x8x128xf32> to vector<8x128xf32>
      %180 = arith.addf %174, %179 : vector<8x128xf32>
      %c0_103 = arith.constant 0 : index
      %c2_104 = arith.constant 2 : index
      %c0_105 = arith.constant 0 : index
      %c0_106 = arith.constant 0 : index
      %181 = vector.load %arg6[%c0_103, %c2_104, %c0_105, %c0_106] : memref<4x4x8x128xf32, #tpu.memory_space<vmem>>, vector<1x1x8x128xf32>
      %182 = vector.shape_cast %181 : vector<1x1x8x128xf32> to vector<8x128xf32>
      %183 = vector.shape_cast %180 : vector<8x128xf32> to vector<1x1x8x128xf32>
      tpu.vector_store %arg6[%c0_103, %c2_104, %c0_105, %c0_106], %183 {strides = array<i32>} : memref<4x4x8x128xf32, #tpu.memory_space<vmem>>, vector<1x1x8x128xf32>,
      %c1_107 = arith.constant 1 : index
      %c2_108 = arith.constant 2 : index
      %c0_109 = arith.constant 0 : index
      %c0_110 = arith.constant 0 : index
      %184 = vector.load %arg6[%c1_107, %c2_108, %c0_109, %c0_110] : memref<4x4x8x128xf32, #tpu.memory_space<vmem>>, vector<1x1x8x128xf32>
      %185 = vector.shape_cast %184 : vector<1x1x8x128xf32> to vector<8x128xf32>
      %cst_111 = arith.constant 0.000000e+00 : f32
      %186 = vector.broadcast %cst_111 : f32 to vector<8x128xf32>
      %187 = arith.select %166, %167, %186 : vector<8x128xi1>, vector<8x128xf32>
      %188 = vector.shape_cast %187 : vector<8x128xf32> to vector<1x8x128xf32>
      %cst_112 = arith.constant dense<0.000000e+00> : vector<8x128xf32>
      %189 = vector.multi_reduction <add>, %188, %cst_112 [0] : vector<1x8x128xf32> to vector<8x128xf32>
      %190 = arith.addf %185, %189 : vector<8x128xf32>
      %c1_113 = arith.constant 1 : index
      %c2_114 = arith.constant 2 : index
      %c0_115 = arith.constant 0 : index
      %c0_116 = arith.constant 0 : index
      %191 = vector.load %arg6[%c1_113, %c2_114, %c0_115, %c0_116] : memref<4x4x8x128xf32, #tpu.memory_space<vmem>>, vector<1x1x8x128xf32>
      %192 = vector.shape_cast %191 : vector<1x1x8x128xf32> to vector<8x128xf32>
      %193 = vector.shape_cast %190 : vector<8x128xf32> to vector<1x1x8x128xf32>
      tpu.vector_store %arg6[%c1_113, %c2_114, %c0_115, %c0_116], %193 {strides = array<i32>} : memref<4x4x8x128xf32, #tpu.memory_space<vmem>>, vector<1x1x8x128xf32>,
      %c2_117 = arith.constant 2 : index
      %c2_118 = arith.constant 2 : index
      %c0_119 = arith.constant 0 : index
      %c0_120 = arith.constant 0 : index
      %194 = vector.load %arg6[%c2_117, %c2_118, %c0_119, %c0_120] : memref<4x4x8x128xf32, #tpu.memory_space<vmem>>, vector<1x1x8x128xf32>
      %195 = vector.shape_cast %194 : vector<1x1x8x128xf32> to vector<8x128xf32>
      %196 = vector.shape_cast %169 : vector<8x128xf32> to vector<1x8x128xf32>
      %cst_121 = arith.constant dense<0.000000e+00> : vector<8x128xf32>
      %197 = vector.multi_reduction <add>, %196, %cst_121 [0] : vector<1x8x128xf32> to vector<8x128xf32>
      %198 = arith.addf %195, %197 : vector<8x128xf32>
      %c2_122 = arith.constant 2 : index
      %c2_123 = arith.constant 2 : index
      %c0_124 = arith.constant 0 : index
      %c0_125 = arith.constant 0 : index
      %199 = vector.load %arg6[%c2_122, %c2_123, %c0_124, %c0_125] : memref<4x4x8x128xf32, #tpu.memory_space<vmem>>, vector<1x1x8x128xf32>
      %200 = vector.shape_cast %199 : vector<1x1x8x128xf32> to vector<8x128xf32>
      %201 = vector.shape_cast %198 : vector<8x128xf32> to vector<1x1x8x128xf32>
      tpu.vector_store %arg6[%c2_122, %c2_123, %c0_124, %c0_125], %201 {strides = array<i32>} : memref<4x4x8x128xf32, #tpu.memory_space<vmem>>, vector<1x1x8x128xf32>,
      %c3_126 = arith.constant 3 : index
      %c2_127 = arith.constant 2 : index
      %c0_128 = arith.constant 0 : index
      %c0_129 = arith.constant 0 : index
      %202 = vector.load %arg6[%c3_126, %c2_127, %c0_128, %c0_129] : memref<4x4x8x128xf32, #tpu.memory_space<vmem>>, vector<1x1x8x128xf32>
      %203 = vector.shape_cast %202 : vector<1x1x8x128xf32> to vector<8x128xf32>
      %cst_130 = arith.constant 0.000000e+00 : f32
      %204 = vector.broadcast %cst_130 : f32 to vector<8x128xf32>
      %205 = arith.select %166, %172, %204 : vector<8x128xi1>, vector<8x128xf32>
      %206 = vector.shape_cast %205 : vector<8x128xf32> to vector<1x8x128xf32>
      %cst_131 = arith.constant dense<0.000000e+00> : vector<8x128xf32>
      %207 = vector.multi_reduction <add>, %206, %cst_131 [0] : vector<1x8x128xf32> to vector<8x128xf32>
      %208 = arith.addf %203, %207 : vector<8x128xf32>
      %c3_132 = arith.constant 3 : index
      %c2_133 = arith.constant 2 : index
      %c0_134 = arith.constant 0 : index
      %c0_135 = arith.constant 0 : index
      %209 = vector.load %arg6[%c3_132, %c2_133, %c0_134, %c0_135] : memref<4x4x8x128xf32, #tpu.memory_space<vmem>>, vector<1x1x8x128xf32>
      %210 = vector.shape_cast %209 : vector<1x1x8x128xf32> to vector<8x128xf32>
      %211 = vector.shape_cast %208 : vector<8x128xf32> to vector<1x1x8x128xf32>
      tpu.vector_store %arg6[%c3_132, %c2_133, %c0_134, %c0_135], %211 {strides = array<i32>} : memref<4x4x8x128xf32, #tpu.memory_space<vmem>>, vector<1x1x8x128xf32>,
      %c3_i32 = arith.constant 3 : i32
      %212 = vector.broadcast %c3_i32 : i32 to vector<8x128xi32>
      %213 = arith.cmpi eq, %6, %212 : vector<8x128xi32>
      %214 = arith.andi %213, %29 : vector<8x128xi1>
      %215 = arith.mulf %61, %65 : vector<8x128xf32>
      %cst_136 = arith.constant 0.000000e+00 : f32
      %216 = vector.broadcast %cst_136 : f32 to vector<8x128xf32>
      %217 = arith.select %29, %215, %216 : vector<8x128xi1>, vector<8x128xf32>
      %218 = vector.extract_strided_slice %34 {offsets = [3, 0, 0], sizes = [1, 8, 128], strides = [1, 1, 1]} : vector<4x8x128xf32> to vector<1x8x128xf32>
      %219 = vector.shape_cast %218 : vector<1x8x128xf32> to vector<8x128xf32>
      %220 = arith.subf %67, %219 : vector<8x128xf32>
      %c0_137 = arith.constant 0 : index
      %c3_138 = arith.constant 3 : index
      %c0_139 = arith.constant 0 : index
      %c0_140 = arith.constant 0 : index
      %221 = vector.load %arg6[%c0_137, %c3_138, %c0_139, %c0_140] : memref<4x4x8x128xf32, #tpu.memory_space<vmem>>, vector<1x1x8x128xf32>
      %222 = vector.shape_cast %221 : vector<1x1x8x128xf32> to vector<8x128xf32>
      %cst_141 = arith.constant 1.000000e+00 : f32
      %cst_142 = arith.constant 0.000000e+00 : f32
      %223 = vector.broadcast %cst_141 : f32 to vector<8x128xf32>
      %224 = vector.broadcast %cst_142 : f32 to vector<8x128xf32>
      %225 = arith.select %214, %223, %224 : vector<8x128xi1>, vector<8x128xf32>
      %226 = vector.shape_cast %225 : vector<8x128xf32> to vector<1x8x128xf32>
      %cst_143 = arith.constant dense<0.000000e+00> : vector<8x128xf32>
      %227 = vector.multi_reduction <add>, %226, %cst_143 [0] : vector<1x8x128xf32> to vector<8x128xf32>
      %228 = arith.addf %222, %227 : vector<8x128xf32>
      %c0_144 = arith.constant 0 : index
      %c3_145 = arith.constant 3 : index
      %c0_146 = arith.constant 0 : index
      %c0_147 = arith.constant 0 : index
      %229 = vector.load %arg6[%c0_144, %c3_145, %c0_146, %c0_147] : memref<4x4x8x128xf32, #tpu.memory_space<vmem>>, vector<1x1x8x128xf32>
      %230 = vector.shape_cast %229 : vector<1x1x8x128xf32> to vector<8x128xf32>
      %231 = vector.shape_cast %228 : vector<8x128xf32> to vector<1x1x8x128xf32>
      tpu.vector_store %arg6[%c0_144, %c3_145, %c0_146, %c0_147], %231 {strides = array<i32>} : memref<4x4x8x128xf32, #tpu.memory_space<vmem>>, vector<1x1x8x128xf32>,
      %c1_148 = arith.constant 1 : index
      %c3_149 = arith.constant 3 : index
      %c0_150 = arith.constant 0 : index
      %c0_151 = arith.constant 0 : index
      %232 = vector.load %arg6[%c1_148, %c3_149, %c0_150, %c0_151] : memref<4x4x8x128xf32, #tpu.memory_space<vmem>>, vector<1x1x8x128xf32>
      %233 = vector.shape_cast %232 : vector<1x1x8x128xf32> to vector<8x128xf32>
      %cst_152 = arith.constant 0.000000e+00 : f32
      %234 = vector.broadcast %cst_152 : f32 to vector<8x128xf32>
      %235 = arith.select %214, %215, %234 : vector<8x128xi1>, vector<8x128xf32>
      %236 = vector.shape_cast %235 : vector<8x128xf32> to vector<1x8x128xf32>
      %cst_153 = arith.constant dense<0.000000e+00> : vector<8x128xf32>
      %237 = vector.multi_reduction <add>, %236, %cst_153 [0] : vector<1x8x128xf32> to vector<8x128xf32>
      %238 = arith.addf %233, %237 : vector<8x128xf32>
      %c1_154 = arith.constant 1 : index
      %c3_155 = arith.constant 3 : index
      %c0_156 = arith.constant 0 : index
      %c0_157 = arith.constant 0 : index
      %239 = vector.load %arg6[%c1_154, %c3_155, %c0_156, %c0_157] : memref<4x4x8x128xf32, #tpu.memory_space<vmem>>, vector<1x1x8x128xf32>
      %240 = vector.shape_cast %239 : vector<1x1x8x128xf32> to vector<8x128xf32>
      %241 = vector.shape_cast %238 : vector<8x128xf32> to vector<1x1x8x128xf32>
      tpu.vector_store %arg6[%c1_154, %c3_155, %c0_156, %c0_157], %241 {strides = array<i32>} : memref<4x4x8x128xf32, #tpu.memory_space<vmem>>, vector<1x1x8x128xf32>,
      %c2_158 = arith.constant 2 : index
      %c3_159 = arith.constant 3 : index
      %c0_160 = arith.constant 0 : index
      %c0_161 = arith.constant 0 : index
      %242 = vector.load %arg6[%c2_158, %c3_159, %c0_160, %c0_161] : memref<4x4x8x128xf32, #tpu.memory_space<vmem>>, vector<1x1x8x128xf32>
      %243 = vector.shape_cast %242 : vector<1x1x8x128xf32> to vector<8x128xf32>
      %244 = vector.shape_cast %217 : vector<8x128xf32> to vector<1x8x128xf32>
      %cst_162 = arith.constant dense<0.000000e+00> : vector<8x128xf32>
      %245 = vector.multi_reduction <add>, %244, %cst_162 [0] : vector<1x8x128xf32> to vector<8x128xf32>
      %246 = arith.addf %243, %245 : vector<8x128xf32>
      %c2_163 = arith.constant 2 : index
      %c3_164 = arith.constant 3 : index
      %c0_165 = arith.constant 0 : index
      %c0_166 = arith.constant 0 : index
      %247 = vector.load %arg6[%c2_163, %c3_164, %c0_165, %c0_166] : memref<4x4x8x128xf32, #tpu.memory_space<vmem>>, vector<1x1x8x128xf32>
      %248 = vector.shape_cast %247 : vector<1x1x8x128xf32> to vector<8x128xf32>
      %249 = vector.shape_cast %246 : vector<8x128xf32> to vector<1x1x8x128xf32>
      tpu.vector_store %arg6[%c2_163, %c3_164, %c0_165, %c0_166], %249 {strides = array<i32>} : memref<4x4x8x128xf32, #tpu.memory_space<vmem>>, vector<1x1x8x128xf32>,
      %c3_167 = arith.constant 3 : index
      %c3_168 = arith.constant 3 : index
      %c0_169 = arith.constant 0 : index
      %c0_170 = arith.constant 0 : index
      %250 = vector.load %arg6[%c3_167, %c3_168, %c0_169, %c0_170] : memref<4x4x8x128xf32, #tpu.memory_space<vmem>>, vector<1x1x8x128xf32>
      %251 = vector.shape_cast %250 : vector<1x1x8x128xf32> to vector<8x128xf32>
      %cst_171 = arith.constant 0.000000e+00 : f32
      %252 = vector.broadcast %cst_171 : f32 to vector<8x128xf32>
      %253 = arith.select %214, %220, %252 : vector<8x128xi1>, vector<8x128xf32>
      %254 = vector.shape_cast %253 : vector<8x128xf32> to vector<1x8x128xf32>
      %cst_172 = arith.constant dense<0.000000e+00> : vector<8x128xf32>
      %255 = vector.multi_reduction <add>, %254, %cst_172 [0] : vector<1x8x128xf32> to vector<8x128xf32>
      %256 = arith.addf %251, %255 : vector<8x128xf32>
      %c3_173 = arith.constant 3 : index
      %c3_174 = arith.constant 3 : index
      %c0_175 = arith.constant 0 : index
      %c0_176 = arith.constant 0 : index
      %257 = vector.load %arg6[%c3_173, %c3_174, %c0_175, %c0_176] : memref<4x4x8x128xf32, #tpu.memory_space<vmem>>, vector<1x1x8x128xf32>
      %258 = vector.shape_cast %257 : vector<1x1x8x128xf32> to vector<8x128xf32>
      %259 = vector.shape_cast %256 : vector<8x128xf32> to vector<1x1x8x128xf32>
      tpu.vector_store %arg6[%c3_173, %c3_174, %c0_175, %c0_176], %259 {strides = array<i32>} : memref<4x4x8x128xf32, #tpu.memory_space<vmem>>, vector<1x1x8x128xf32>,
    } else {
    }
    %c0_i32_10 = arith.constant 0 : i32
    %17 = arith.cmpi eq, %arg2, %c0_i32_10 : i32
    %18 = arith.extui %17 : i1 to i32
    %c0_i32_11 = arith.constant 0 : i32
    %19 = arith.cmpi ne, %18, %c0_i32_11 : i32
    scf.if %19 {
      %c0_12 = arith.constant 0 : index
      %c0_13 = arith.constant 0 : index
      %c0_14 = arith.constant 0 : index
      %c0_15 = arith.constant 0 : index
      %20 = vector.load %arg6[%c0_12, %c0_13, %c0_14, %c0_15] : memref<4x4x8x128xf32, #tpu.memory_space<vmem>>, vector<1x4x8x128xf32>
      %21 = vector.shape_cast %20 : vector<1x4x8x128xf32> to vector<4x8x128xf32>
      %cst = arith.constant dense<0.000000e+00> : vector<4x128xf32>
      %22 = vector.multi_reduction <add>, %21, %cst [1] : vector<4x8x128xf32> to vector<4x128xf32>
      %c0_16 = arith.constant 0 : index
      %c0_17 = arith.constant 0 : index
      %c0_18 = arith.constant 0 : index
      %c0_19 = arith.constant 0 : index
      %23 = vector.load %arg5[%c0_16, %c0_17, %c0_18, %c0_19] : memref<1x4x4x128xf32, #tpu.memory_space<vmem>>, vector<1x1x4x128xf32>
      %24 = vector.shape_cast %23 : vector<1x1x4x128xf32> to vector<4x128xf32>
      %25 = vector.shape_cast %22 : vector<4x128xf32> to vector<1x1x4x128xf32>
      tpu.vector_store %arg5[%c0_16, %c0_17, %c0_18, %c0_19], %25 {strides = array<i32>} : memref<1x4x4x128xf32, #tpu.memory_space<vmem>>, vector<1x1x4x128xf32>,
      %c1 = arith.constant 1 : index
      %c0_20 = arith.constant 0 : index
      %c0_21 = arith.constant 0 : index
      %c0_22 = arith.constant 0 : index
      %26 = vector.load %arg6[%c1, %c0_20, %c0_21, %c0_22] : memref<4x4x8x128xf32, #tpu.memory_space<vmem>>, vector<1x4x8x128xf32>
      %27 = vector.shape_cast %26 : vector<1x4x8x128xf32> to vector<4x8x128xf32>
      %cst_23 = arith.constant dense<0.000000e+00> : vector<4x128xf32>
      %28 = vector.multi_reduction <add>, %27, %cst_23 [1] : vector<4x8x128xf32> to vector<4x128xf32>
      %c0_24 = arith.constant 0 : index
      %c1_25 = arith.constant 1 : index
      %c0_26 = arith.constant 0 : index
      %c0_27 = arith.constant 0 : index
      %29 = vector.load %arg5[%c0_24, %c1_25, %c0_26, %c0_27] : memref<1x4x4x128xf32, #tpu.memory_space<vmem>>, vector<1x1x4x128xf32>
      %30 = vector.shape_cast %29 : vector<1x1x4x128xf32> to vector<4x128xf32>
      %31 = vector.shape_cast %28 : vector<4x128xf32> to vector<1x1x4x128xf32>
      tpu.vector_store %arg5[%c0_24, %c1_25, %c0_26, %c0_27], %31 {strides = array<i32>} : memref<1x4x4x128xf32, #tpu.memory_space<vmem>>, vector<1x1x4x128xf32>,
      %c2 = arith.constant 2 : index
      %c0_28 = arith.constant 0 : index
      %c0_29 = arith.constant 0 : index
      %c0_30 = arith.constant 0 : index
      %32 = vector.load %arg6[%c2, %c0_28, %c0_29, %c0_30] : memref<4x4x8x128xf32, #tpu.memory_space<vmem>>, vector<1x4x8x128xf32>
      %33 = vector.shape_cast %32 : vector<1x4x8x128xf32> to vector<4x8x128xf32>
      %cst_31 = arith.constant dense<0.000000e+00> : vector<4x128xf32>
      %34 = vector.multi_reduction <add>, %33, %cst_31 [1] : vector<4x8x128xf32> to vector<4x128xf32>
      %c0_32 = arith.constant 0 : index
      %c2_33 = arith.constant 2 : index
      %c0_34 = arith.constant 0 : index
      %c0_35 = arith.constant 0 : index
      %35 = vector.load %arg5[%c0_32, %c2_33, %c0_34, %c0_35] : memref<1x4x4x128xf32, #tpu.memory_space<vmem>>, vector<1x1x4x128xf32>
      %36 = vector.shape_cast %35 : vector<1x1x4x128xf32> to vector<4x128xf32>
      %37 = vector.shape_cast %34 : vector<4x128xf32> to vector<1x1x4x128xf32>
      tpu.vector_store %arg5[%c0_32, %c2_33, %c0_34, %c0_35], %37 {strides = array<i32>} : memref<1x4x4x128xf32, #tpu.memory_space<vmem>>, vector<1x1x4x128xf32>,
      %c3 = arith.constant 3 : index
      %c0_36 = arith.constant 0 : index
      %c0_37 = arith.constant 0 : index
      %c0_38 = arith.constant 0 : index
      %38 = vector.load %arg6[%c3, %c0_36, %c0_37, %c0_38] : memref<4x4x8x128xf32, #tpu.memory_space<vmem>>, vector<1x4x8x128xf32>
      %39 = vector.shape_cast %38 : vector<1x4x8x128xf32> to vector<4x8x128xf32>
      %cst_39 = arith.constant dense<0.000000e+00> : vector<4x128xf32>
      %40 = vector.multi_reduction <add>, %39, %cst_39 [1] : vector<4x8x128xf32> to vector<4x128xf32>
      %c0_40 = arith.constant 0 : index
      %c3_41 = arith.constant 3 : index
      %c0_42 = arith.constant 0 : index
      %c0_43 = arith.constant 0 : index
      %41 = vector.load %arg5[%c0_40, %c3_41, %c0_42, %c0_43] : memref<1x4x4x128xf32, #tpu.memory_space<vmem>>, vector<1x1x4x128xf32>
      %42 = vector.shape_cast %41 : vector<1x1x4x128xf32> to vector<4x128xf32>
      %43 = vector.shape_cast %40 : vector<4x128xf32> to vector<1x1x4x128xf32>
      tpu.vector_store %arg5[%c0_40, %c3_41, %c0_42, %c0_43], %43 {strides = array<i32>} : memref<1x4x4x128xf32, #tpu.memory_space<vmem>>, vector<1x1x4x128xf32>,
    } else {
    }
    return
  }
  func.func @transform_0(%arg0: i32, %arg1: i32, %arg2: i32) -> (i32, i32, i32, i32) {
    %c1_i32 = arith.constant 1 : i32
    %0 = arith.muli %arg1, %c1_i32 : i32
    %1 = arith.addi %0, %arg2 : i32
    %c0_i32 = arith.constant 0 : i32
    %c0_i32_0 = arith.constant 0 : i32
    %c0_i32_1 = arith.constant 0 : i32
    return %arg0, %c0_i32, %1, %c0_i32_0 : i32, i32, i32, i32
  }
  func.func @transform_1(%arg0: i32, %arg1: i32, %arg2: i32) -> (i32, i32, i32) {
    %c1_i32 = arith.constant 1 : i32
    %0 = arith.muli %arg1, %c1_i32 : i32
    %1 = arith.addi %0, %arg2 : i32
    %c0_i32 = arith.constant 0 : i32
    %c0_i32_0 = arith.constant 0 : i32
    return %arg0, %1, %c0_i32 : i32, i32, i32
  }
  func.func @transform_2(%arg0: i32, %arg1: i32, %arg2: i32) -> (i32, i32, i32, i32) {
    %c1_i32 = arith.constant 1 : i32
    %0 = arith.muli %arg0, %c1_i32 : i32
    %1 = arith.addi %0, %arg1 : i32
    %c0_i32 = arith.constant 0 : i32
    %c0_i32_0 = arith.constant 0 : i32
    %c0_i32_1 = arith.constant 0 : i32
    %c0_i32_2 = arith.constant 0 : i32
    return %1, %c0_i32, %c0_i32_0, %c0_i32_1 : i32, i32, i32, i32
  }
}

</mosaic_0001>

<bundles_post_ra>
// kernel: tpu_custom_call.1
= control target key start
LH: loop header
LB: loop body
LE: loop exit
PB: predicated region body
PF: predicated region fallthrough
CT: control target
= control target key end

     0   :  { %7 = vsyncpa [#allocation4], 0  ;;  %s1442_s0 = inlined_call_operand.hbm [shape: f32[2,4,8,128], index: 0, kind: input, shape index: {}]   ;;  %s1443_s1 = inlined_call_operand.hbm [shape: s32[2,8,128], index: 1, kind: input, shape index: {}]   ;;  %s1444_s2 = inlined_call_operand.hbm [shape: f32[2,4,4,128], index: 2, kind: output, shape index: {}]  }
   0x1   :  { %9 = vsyncpa [#allocation4 + $0x1], 0 }
   0x2   :  { %10 = vsyncpa [#allocation7], 0 }
   0x3   :  { %12 = vsyncpa [#allocation7 + $0x1], 0 }
   0x4   :  { %13 = vsyncpa [#allocation5], 0 }
   0x5   :  { %15 = vsyncpa [#allocation5 + $0x1], 0  ;;  %s1111_s9 = smov 0   ;;  %s1113_s10 = smov 0  }
   0x6   :  { %s1115_s11 = smov 0   ;;  %s1117_s12 = smov 0  }
   0x7   :  { %s1119_s13 = smov 0   ;;  %s1121_s14 = smov 0  }
   0x8 LB: > { %s833_s15 = sadd.s32 4294967295, %s1086_s14   ;;  %s834_s16 = sadd.s32 4294967294, %s1086_s14   ;;  %s1086_s14 = sphi %s1121_s14, %s21_s14   ;;  %s1082_s13 = sphi %s1119_s13, %s1471_s13   ;;  %s1078_s12 = sphi %s1117_s12, %s1470_s12   ;;  %s1074_s11 = sphi %s1115_s11, %s1469_s11   ;;  %s1070_s10 = sphi %s1113_s10, %s1468_s10   ;;  %s1066_s9 = sphi %s1111_s9, %s1467_s9  }
   0x9   : > { %s40_s17 = sadd.s32 1, %s1082_s13  ;;  %s51_s18 = sadd.s32 1, %s1074_s11 }
   0xa   : > { %p42_p0 = scmp.ge.s32.totalorder %s40_s17, 2  ;;  %p58_p1 = scmp.ne.s32.totalorder %s1074_s11, %s1070_s10 }
   0xb   : > { %p59_p2 = scmp.eq.s32.totalorder %s1086_s14, 0  ;;  %p64_p3 = scmp.ne.s32.totalorder %s1070_s10, %s1066_s9 }
   0xc   : > { %s1473_s17 = smov (%p42_p0, %s40_s17), 0  ;;  %p65_p5 = scmp.eq.s32.totalorder %s833_s15, 0 }
   0xd   : > { %p1152_p4 = por %p59_p2, %p58_p1  ;;  %s46_s20 = ssub.s32 %s1082_s13, %s1473_s17 }
   0xe   : > { %p120_p6 = scmp.eq.s32.totalorder %s833_s15, 1  ;;  %p49_p7 = scmp.eq.s32.totalorder %s46_s20, 0 }
   0xf   : > { %p1158_p8 = por %p65_p5, %p64_p3  ;;  %p126_p10 = scmp.eq.s32.totalorder %s834_s16, 1 }
  0x10   : > { %p1162_p9 = por %p120_p6, %p58_p1  ;;  %p873_p13 = scmp.lt.s32.totalorder %s1086_s14, 2 }
  0x11   : > { %s1448_s21 = scalar_select %p1158_p8, 1, 0 }
  0x12   : > { %s1449_s22 = scalar_select %p1162_p9, 1, 0 }
  0x13   : > { %s1167_s23 = scalar_select %p49_p7, %s1074_s11, %s51_s18  }
  0x14   : > { %p1169_p11 = por %p126_p10, %p64_p3  ;;  %s1176_s25 = sand.u32 1, %s1074_s11  }
  0x15   : > { %s837_s26 = sshll.u32 %s1176_s25, 5  ;;  %s854_s27 = sshll.u32 %s1082_s13, 9 }
  0x16   : > { %s1450_s24 = scalar_select %p1169_p11, 1, 0 }
  0x17   : > { %s1183_s30 = scalar_lea.hbm %s1442_s0, %s854_s27  ;;  %s150_s3 = scalar_lea.vmem [#allocation3], %s837_s26 }
  0x18   : > { %s159_s4 = sshll.u32 %s150_s3, 4  ;;  %p1189_p0 = pnand %p873_p13, %p1152_p4  ;;  %s1185_s4 = int_to_ptr.vmem [resolvable:$true] %s159_s4 }
  0x19   : > { %s147_s6 = scalar_lea.sflag [#allocation4], %s1176_s25  ;;  %s940_s7 = scalar_lea.hbm %s1183_s30, 512 }
  0x1a   : > { %p941_p2 = scmp.ne.s32.totalorder %s1183_s30, %s940_s7  ;;  %p942_p3 = pneg %p1189_p0 }
  0x1b   : > { %s945_s16 = scalar_lea.hbm %s1442_s0, 1024  ;;  %p946_p4 = scmp.lt.u32.totalorder %s1183_s30, %s1442_s0 }
  0x1c   : > { %p943_p5 = pnand %p942_p3, %p941_p2  ;;  %p947_p7 = scmp.lt.u32.totalorder %s945_s16, %s940_s7 }
  0x1d   : > { %p949_p13 = scmp.lt.u32.totalorder %s940_s7, %s1183_s30 }
  0x1e   : > { %p944_p6 = pneg %p943_p5  ;;  %p948_p10 = por %p947_p7, %p946_p4 }
  0x20   : > { %p950_p12 = por %p949_p13, %p948_p10 }
  0x22   : > { %p951_p1 = pnand %p950_p12, %p944_p6 }
  0x24   : > { %954 = shalt.err (!%p951_p1)
}
  0x25   : > { %s955_s20 = scalar_lea.vmem %s1185_s4, 512  ;;  %s1088_s26 = smov [#allocation3]  }
  0x26   : > { %p956_p2 = scmp.ne.s32.totalorder %s1185_s4, %s955_s20  ;;  %s960_s27 = sshll.u32 %s1088_s26, 4  ;;  %s961_s27 = int_to_ptr.vmem [resolvable:$false] %s960_s27 }
  0x27   : > { %s962_s28 = scalar_lea.vmem %s961_s27, 1024  ;;  %p963_p9 = scmp.lt.s32.totalorder %s1185_s4, %s961_s27 }
  0x28   : > { %p958_p5 = pnand %p956_p2, %p942_p3  ;;  %p964_p4 = scmp.lt.s32.totalorder %s962_s28, %s955_s20 }
  0x2a   : > { %p959_p11 = pneg %p958_p5  ;;  %p965_p7 = por %p964_p4, %p963_p9 }
  0x2c   : > { %p966_p10 = pnand %p965_p7, %p959_p11 }
  0x2e   : > { %969 = shalt.err (!%p966_p10)
}
  0x2f   : > { %s1089_s29 = smov 128   ;;  %s1090_s3 = smov 8  }
  0x30   : > { %865 = dma.hbm_to_vmem [thread:$0]  (!%p1189_p0), %s1183_s30, 512, %s1185_s4, %s147_s6, %s1089_s29, %s1089_s29, %s1090_s3  }
  0x31   : > { %p187_p12 = scmp.lt.s32.totalorder %s1086_s14, 3  ;;  %s840_s7 = sshll.u32 %s1176_s25, 3 }
  0x32   : > { %s841_s8 = sshll.u32 %s1082_s13, 7  ;;  %p1452_p9 = scmp.ge.s32.totalorder %s1086_s14, 1 }
  0x33   : > { %s1234_s19 = scalar_lea.hbm %s1443_s1, %s841_s8  ;;  %s173_s20 = scalar_lea.vmem [#allocation6], %s840_s7 }
  0x34   : > { %p1227_p11 = pnand %p1452_p9, %p187_p12  ;;  %s182_s26 = sshll.u32 %s173_s20, 4  ;;  %s183_s26 = int_to_ptr.vmem [resolvable:$true] %s182_s26 }
  0x35   : > { %s170_s30 = scalar_lea.sflag [#allocation7], %s1176_s25  ;;  %s970_s4 = scalar_lea.hbm %s1234_s19, 128 }
  0x36   : > { %s1453_s15 = scalar_select %p1227_p11, 1, 0 }
  0x37   : > { %p971_p1 = scmp.ne.s32.totalorder %s1234_s19, %s970_s4  ;;  %s975_s28 = scalar_lea.hbm %s1443_s1, 256 }
  0x38   : > { %p976_p2 = scmp.lt.u32.totalorder %s1234_s19, %s1443_s1  ;;  %p977_p5 = scmp.lt.u32.totalorder %s975_s28, %s970_s4 }
  0x39   : > { %p973_p6 = pnand %p971_p1, %p942_p3  ;;  %p979_p7 = scmp.lt.u32.totalorder %s970_s4, %s1234_s19 }
  0x3a   : > { %p978_p4 = por %p977_p5, %p976_p2 }
  0x3b   : > { %p974_p13 = pneg %p973_p6 }
  0x3c   : > { %p980_p10 = por %p979_p7, %p978_p4 }
  0x3e   : > { %p981_p12 = pnand %p980_p10, %p974_p13 }
  0x40   : > { %984 = shalt.err (!%p981_p12)
}
  0x41   : > { %s985_s25 = scalar_lea.vmem %s183_s26, 128  ;;  %s1091_s7 = smov [#allocation6]  }
  0x42   : > { %p986_p9 = scmp.ne.s32.totalorder %s183_s26, %s985_s25  ;;  %s990_s8 = sshll.u32 %s1091_s7, 4  ;;  %s991_s8 = int_to_ptr.vmem [resolvable:$false] %s990_s8 }
  0x43   : > { %s992_s16 = scalar_lea.vmem %s991_s8, 256  ;;  %p993_p8 = scmp.lt.s32.totalorder %s183_s26, %s991_s8 }
  0x44   : > { %p988_p1 = pnand %p986_p9, %p942_p3  ;;  %p994_p11 = scmp.lt.s32.totalorder %s992_s16, %s985_s25 }
  0x46   : > { %p989_p6 = pneg %p988_p1  ;;  %p995_p2 = por %p994_p11, %p993_p8 }
  0x48   : > { %p996_p5 = pnand %p995_p2, %p989_p6 }
  0x4a   : > { %999 = shalt.err (!%p996_p5)
}
  0x4b   : > { %868 = dma.hbm_to_vmem [thread:$0]  (!%p1189_p0), %s1234_s19, 128, %s183_s26, %s170_s30  }
  0x4c   : > { %p1454_p13 = scmp.ne.s32.totalorder %s1453_s15, 0 }
  0x4d   : > { %s1259_s18 = sand.u32 (!%p1454_p13), 1, %s1070_s10   ;;  %p1455_p3 = scmp.ne.s32.totalorder (!%p1454_p13), %s1448_s21, 0 }
  0x4e   : > { %191 = sbr.rel (%p1454_p13) target bundleno = 189 (0xbd), region = 28  ;;  %s843_s20 = sshll.u32 (!%p1454_p13), %s1259_s18, 5 }
  0x4f   : > { %s194_s4 = scalar_lea.sflag (!%p1454_p13), [#allocation4], %s1259_s18  ;;  %s197_s6 = scalar_lea.vmem (!%p1454_p13), [#allocation3], %s843_s20 }
  0x55   : > { %1053 = dma.done.wait (%p1455_p3), %s194_s4, 512  }
  0x56   : > { %1055 = vsyncadd (%p1455_p3), %s194_s4, 4294966784  ;;  %s844_s5 = sshll.u32 %s1259_s18, 3  ;;  %s203_s15 = scalar_lea.sflag [#allocation7], %s1259_s18 }
  0x57   : > { %s206_s19 = scalar_lea.vmem [#allocation6], %s844_s5 }
  0x58   : > { %1057 = dma.done.wait (%p1455_p3), %s203_s15, 128  }
  0x59   : > { %1059 = vsyncadd (%p1455_p3), %s203_s15, 4294967168  ;;  %v396_v0 = vlaneseq  ;;  %v259_v5 = vld [vmem:[%s206_s19] sm:$0xff]  ;;  %v257_v8 = vld [vmem:[%s197_s6 + $0x10] sm:$0xff]  ;;  %v1092_v14 = vmov 0.0   ;;  %s845_s21 = sshll.u32 %s1259_s18, 4  ;;  %vm580_vm9 = vcmask 1041409  }
  0x5a   : > { %v255_v6 = vld [vmem:[%s197_s6] sm:$0xff]  ;;  %v256_v7 = vld [vmem:[%s197_s6 + $0x8] sm:$0xff]  ;;  %vm434_vm1 = vcmp.eq.s32.totalorder %v259_v5, 0  ;;  %vm461_vm2 = vcmp.eq.s32.totalorder %v259_v5, 1  ;;  %vm489_vm3 = vcmp.eq.s32.totalorder %v259_v5, 2  ;;  %v258_v9 = vld [vmem:[%s197_s6 + $0x18] sm:$0xff] }
  0x5b   : > { %v397_v1 = vshrl.u32 %v396_v0, 7  ;;  %v399_v2 = vand.u32 127, %v396_v0  ;;  %vm517_vm5 = vcmp.eq.s32.totalorder %v259_v5, 3  ;;  %vm582_vm10 = vcmask 1042434   ;;  %s1342_s26 = scalar_lea.vmem [#allocation8], %s845_s21  ;;  %s855_s27 = sshll.u32 %s1078_s12, 8 }
  0x5c   : > { %vm584_vm11 = vcmask 1043459   ;;  %s720_s30 = sshll.u32 %s1342_s26, 4  ;;  %s1390_s3 = scalar_lea.hbm %s1444_s2, %s855_s27  ;;  %s1384_s30 = int_to_ptr.vmem [resolvable:$true] %s720_s30 }
  0x5d   : > { %v401_v3 = vmul.u32 128, %v397_v1  ;;  %s706_s12 = scalar_lea.sflag [#allocation5], %s1259_s18  ;;  %s1000_s25 = scalar_lea.vmem %s1384_s30, 256 }
  0x5e   : > { %p1001_p8 = scmp.ne.s32.totalorder %s1384_s30, %s1000_s25  ;;  %p1464_p0 = scmp.ne.s32.totalorder %s1449_s22, 0 }
  0x5f   : > { %v1273_v4 = vadd.s32 %v401_v3, %v399_v2  ;;  %s1093_s7 = smov [#allocation8]  }
  0x60   : > { %p1002_p11 = pnand %p1001_p8, %p1464_p0  ;;  %s1004_s8 = sshll.u32 %s1093_s7, 4  ;;  %s1005_s8 = int_to_ptr.vmem [resolvable:$false] %s1004_s8 }
  0x61   : > { %vm405_vm0 = vcmp.lt.s32.totalorder %v1273_v4, 256  ;;  %s1006_s16 = scalar_lea.vmem %s1005_s8, 512  ;;  %p1007_p7 = scmp.lt.s32.totalorder %s1384_s30, %s1005_s8 }
  0x62   : > { %vm1278_vm4 = vmand %vm434_vm1, %vm405_vm0  ;;  %v1284_v11 = vsel %vm405_vm0, %v255_v6, 0.0  ;;  %v1288_v12 = vsel %vm405_vm0, %v256_v7, 0.0  ;;  %v1292_v13 = vsel %vm405_vm0, %v257_v8, 0.0  ;;  %v1314_v21 = vsel %vm405_vm0, %v258_v9, 0.0  ;;  %p1003_p4 = pneg %p1002_p11  ;;  %p1008_p10 = scmp.lt.s32.totalorder %s1006_s16, %s1000_s25 }
  0x63   : > { %v440_v15 = vsel %vm1278_vm4, 1.0, %v1092_v14  ;;  %vm1298_vm6 = vmand %vm461_vm2, %vm405_vm0  ;;  %v412_v17 = vmax.f32 %v1284_v11, %v1288_v12 }
  0x64   : > { %v468_v18 = vsel %vm1298_vm6, 1.0, %v1092_v14  ;;  %vm1308_vm7 = vmand %vm489_vm3, %vm405_vm0  ;;  %v552_v20 = vrot.slane %v440_v15, 4  ;;  %p1009_p12 = por %p1008_p10, %p1007_p7 }
  0x65   : > { %v496_v22 = vsel %vm1308_vm7, 1.0, %v1092_v14  ;;  %vm1320_vm8 = vmand %vm517_vm5, %vm405_vm0  ;;  %v558_v24 = vrot.slane %v468_v18, 4  ;;  %v413_v25 = vmax.f32 %v412_v17, %v1292_v13 }
  0x66   : > { %v524_v26 = vsel %vm1320_vm8, 1.0, %v1092_v14  ;;  %v553_v27 = vadd.f32 %v552_v20, %v440_v15  ;;  %v564_v28 = vrot.slane %v496_v22, 4  ;;  %p1010_p9 = pnand %p1009_p12, %p1003_p4 }
  0x67   : > { %v559_v29 = vadd.f32 %v558_v24, %v468_v18  ;;  %v570_v30 = vrot.slane %v524_v26, 4  ;;  %v1328_v31 = vmax.f32 %v413_v25, %v1314_v21 }
  0x68   : > { %v554_v32 = vrot.slane %v553_v27, 2  ;;  %v565_v33 = vadd.f32 %v564_v28, %v496_v22 }
  0x69   : > { %v560_v34 = vrot.slane %v559_v29, 2  ;;  %v571_v35 = vadd.f32 %v570_v30, %v524_v26  ;;  %v415_v36 = vsub.f32 %v1284_v11, %v1328_v31  ;;  %v418_v37 = vsub.f32 %v1288_v12, %v1328_v31 }
  0x6a   : > { %v555_v38 = vadd.f32 %v554_v32, %v553_v27  ;;  %v566_v39 = vrot.slane %v565_v33, 2  ;;  %v421_v40 = vsub.f32 %v1292_v13, %v1328_v31  ;;  %v424_v41 = vsub.f32 %v1314_v21, %v1328_v31 }
  0x6b   : > { %v561_v42 = vadd.f32 %v560_v34, %v559_v29  ;;  %v572_v43 = vrot.slane %v571_v35, 2  ;;  %v416_v44 = vmul.f32 1.442695, %v415_v36  ;;  %v419_v45 = vmul.f32 1.442695, %v418_v37 }
  0x6c   : > { %v556_v46 = vrot.slane %v555_v38, 1  ;;  %v567_v47 = vadd.f32 %v566_v39, %v565_v33  ;;  %v422_v48 = vmul.f32 1.442695, %v421_v40  ;;  %v425_v49 = vmul.f32 1.442695, %v424_v41 }
  0x6d   : > { %v562_v50 = vrot.slane %v561_v42, 1  ;;  %v573_v51 = vadd.f32 %v572_v43, %v571_v35  ;;  %928 = vpow2.f32 %v416_v44 }
  0x6e   : > { %v557_v52 = vadd.f32 %v556_v46, %v555_v38  ;;  %v568_v53 = vrot.slane %v567_v47, 1  ;;  %930 = vpow2.f32 %v419_v45 }
  0x6f   : > { %v563_v54 = vadd.f32 %v562_v50, %v561_v42  ;;  %v574_v55 = vrot.slane %v573_v51, 1  ;;  %932 = vpow2.f32 %v422_v48 }
  0x70   : > { %v569_v56 = vadd.f32 %v568_v53, %v567_v47  ;;  %934 = vpow2.f32 %v425_v49 }
  0x71   : > { %v575_v57 = vadd.f32 %v574_v55, %v573_v51  ;;  %v581_v58 = vsel %vm580_vm9, %v563_v54, %v557_v52 }
  0x72   : > { %v583_v59 = vsel %vm582_vm10, %v569_v56, %v581_v58 }
  0x73   : > { %v585_v60 = vsel %vm584_vm11, %v575_v57, %v583_v59 }
  0x74   : > { %587 = vst [vmem:[%s1342_s26] sm:$0xf] %v585_v60 }
  0x77   : > { %v929_v61 = vpop.eup %928 }
  0x78   : > { %v931_v62 = vpop.eup %930 }
  0x79   : > { %v933_v63 = vpop.eup %932  ;;  %v427_v0 = vadd.f32 %v931_v62, %v929_v61 }
  0x7a   : > { %v935_v1 = vpop.eup %934 }
  0x7b   : > { %v428_v2 = vadd.f32 %v933_v63, %v427_v0 }
  0x7d   : > { %v429_v3 = vadd.f32 %v935_v1, %v428_v2 }
  0x7f   : > { %936 = vrcp.f32 %v429_v3 }
  0x80   : > { %938 = vlog2.f32 %v429_v3 }
  0x89   : > { %v937_v5 = vpop.eup %936 }
  0x8a   : > { %v939_v6 = vpop.eup %938  ;;  %v436_v7 = vmul.f32 %v937_v5, %v929_v61  ;;  %v463_v8 = vmul.f32 %v937_v5, %v931_v62  ;;  %v491_v9 = vmul.f32 %v937_v5, %v933_v63  ;;  %v519_v14 = vmul.f32 %v937_v5, %v935_v1 }
  0x8b   : > { %v432_v15 = vmul.f32 0.6931472, %v939_v6 }
  0x8c   : > { %v446_v17 = vsel %vm1278_vm4, %v436_v7, 0.0  ;;  %v474_v18 = vsel %vm1298_vm6, %v463_v8, 0.0  ;;  %v502_v20 = vsel %vm1308_vm7, %v491_v9, 0.0  ;;  %v530_v22 = vsel %vm1320_vm8, %v519_v14, 0.0 }
  0x8d   : > { %v593_v24 = vrot.slane %v446_v17, 4  ;;  %v599_v25 = vrot.slane %v474_v18, 4  ;;  %v605_v26 = vrot.slane %v502_v20, 4  ;;  %v611_v27 = vrot.slane %v530_v22, 4 }
  0x8e   : > { %v437_v28 = vsel %vm405_vm0, %v436_v7, 0.0  ;;  %v464_v29 = vsel %vm405_vm0, %v463_v8, 0.0  ;;  %v492_v30 = vsel %vm405_vm0, %v491_v9, 0.0  ;;  %v520_v32 = vsel %vm405_vm0, %v519_v14, 0.0 }
  0x8f   : > { %v594_v33 = vadd.f32 %v593_v24, %v446_v17  ;;  %v600_v34 = vadd.f32 %v599_v25, %v474_v18  ;;  %v606_v35 = vadd.f32 %v605_v26, %v502_v20  ;;  %v612_v36 = vadd.f32 %v611_v27, %v530_v22 }
  0x90   : > { %v632_v37 = vrot.slane %v437_v28, 4  ;;  %v638_v38 = vrot.slane %v464_v29, 4  ;;  %v644_v39 = vrot.slane %v492_v30, 4  ;;  %v650_v40 = vrot.slane %v520_v32, 4 }
  0x91   : > { %v595_v41 = vrot.slane %v594_v33, 2  ;;  %v601_v42 = vrot.slane %v600_v34, 2  ;;  %v607_v43 = vrot.slane %v606_v35, 2  ;;  %v613_v44 = vrot.slane %v612_v36, 2 }
  0x92   : > { %v633_v45 = vadd.f32 %v632_v37, %v437_v28  ;;  %v639_v46 = vadd.f32 %v638_v38, %v464_v29  ;;  %v645_v47 = vadd.f32 %v644_v39, %v492_v30  ;;  %v651_v48 = vadd.f32 %v650_v40, %v520_v32 }
  0x93   : > { %v596_v49 = vadd.f32 %v595_v41, %v594_v33  ;;  %v602_v50 = vadd.f32 %v601_v42, %v600_v34  ;;  %v608_v4 = vadd.f32 %v607_v43, %v606_v35  ;;  %v614_v51 = vadd.f32 %v613_v44, %v612_v36 }
  0x94   : > { %v634_v52 = vrot.slane %v633_v45, 2  ;;  %v640_v53 = vrot.slane %v639_v46, 2  ;;  %v646_v54 = vrot.slane %v645_v47, 2  ;;  %v652_v55 = vrot.slane %v651_v48, 2 }
  0x95   : > { %v597_v56 = vrot.slane %v596_v49, 1  ;;  %v603_v57 = vrot.slane %v602_v50, 1  ;;  %v609_v58 = vrot.slane %v608_v4, 1  ;;  %v615_v59 = vrot.slane %v614_v51, 1 }
  0x96   : > { %v635_v60 = vadd.f32 %v634_v52, %v633_v45  ;;  %v641_v61 = vadd.f32 %v640_v53, %v639_v46  ;;  %v647_v62 = vadd.f32 %v646_v54, %v645_v47  ;;  %v653_v63 = vadd.f32 %v652_v55, %v651_v48 }
  0x97   : > { %v598_v0 = vadd.f32 %v597_v56, %v596_v49  ;;  %v604_v1 = vadd.f32 %v603_v57, %v602_v50  ;;  %v610_v2 = vadd.f32 %v609_v58, %v608_v4  ;;  %v616_v3 = vadd.f32 %v615_v59, %v614_v51 }
  0x98   : > { %v636_v5 = vrot.slane %v635_v60, 1  ;;  %v642_v6 = vrot.slane %v641_v61, 1  ;;  %v648_v7 = vrot.slane %v647_v62, 1  ;;  %v654_v8 = vrot.slane %v653_v63, 1 }
  0x99   : > { %v621_v9 = vsel %vm580_vm9, %v604_v1, %v598_v0  ;;  %v433_v14 = vadd.f32 %v432_v15, %v1328_v31 }
  0x9a   : > { %v622_v17 = vsel %vm582_vm10, %v610_v2, %v621_v9  ;;  %v637_v18 = vadd.f32 %v636_v5, %v635_v60  ;;  %v643_v20 = vadd.f32 %v642_v6, %v641_v61  ;;  %v649_v22 = vadd.f32 %v648_v7, %v647_v62 }
  0x9b   : > { %v623_v24 = vsel %vm584_vm11, %v616_v3, %v622_v17  ;;  %v655_v25 = vadd.f32 %v654_v8, %v653_v63  ;;  %v438_v26 = vsub.f32 %v433_v14, %v1284_v11  ;;  %v465_v27 = vsub.f32 %v433_v14, %v1288_v12 }
  0x9c   : > { %846 = vst [vmem:[%s1342_s26 + $0x4] sm:$0xf] %v623_v24  ;;  %v660_v28 = vsel %vm580_vm9, %v643_v20, %v637_v18  ;;  %v493_v29 = vsub.f32 %v433_v14, %v1292_v13  ;;  %v521_v31 = vsub.f32 %v433_v14, %v1314_v21 }
  0x9d   : > { %v661_v15 = vsel %vm582_vm10, %v649_v22, %v660_v28  ;;  %v457_v30 = vsel %vm1278_vm4, %v438_v26, 0.0  ;;  %v485_v32 = vsel %vm1298_vm6, %v465_v27, 0.0 }
  0x9e   : > { %v662_v33 = vsel %vm584_vm11, %v655_v25, %v661_v15  ;;  %v513_v11 = vsel %vm1308_vm7, %v493_v29, 0.0  ;;  %v541_v12 = vsel %vm1320_vm8, %v521_v31, 0.0  ;;  %v671_v34 = vrot.slane %v457_v30, 4 }
  0x9f   : > { %847 = vst [vmem:[%s1342_s26 + $0x8] sm:$0xf] %v662_v33  ;;  %v677_v13 = vrot.slane %v485_v32, 4  ;;  %v683_v21 = vrot.slane %v513_v11, 4  ;;  %v689_v35 = vrot.slane %v541_v12, 4 }
  0xa0   : > { %v672_v36 = vadd.f32 %v671_v34, %v457_v30 }
  0xa1   : > { %v678_v10 = vadd.f32 %v677_v13, %v485_v32  ;;  %v684_v37 = vadd.f32 %v683_v21, %v513_v11  ;;  %v690_v16 = vadd.f32 %v689_v35, %v541_v12 }
  0xa2   : > { %v673_v38 = vrot.slane %v672_v36, 2 }
  0xa3   : > { %v679_v39 = vrot.slane %v678_v10, 2  ;;  %v685_v40 = vrot.slane %v684_v37, 2  ;;  %v691_v41 = vrot.slane %v690_v16, 2 }
  0xa4   : > { %v674_v19 = vadd.f32 %v673_v38, %v672_v36 }
  0xa5   : > { %v680_v42 = vadd.f32 %v679_v39, %v678_v10  ;;  %v686_v43 = vadd.f32 %v685_v40, %v684_v37  ;;  %v692_v23 = vadd.f32 %v691_v41, %v690_v16 }
  0xa6   : > { %v675_v44 = vrot.slane %v674_v19, 1 }
  0xa7   : > { %v681_v45 = vrot.slane %v680_v42, 1  ;;  %v687_v46 = vrot.slane %v686_v43, 1  ;;  %v693_v47 = vrot.slane %v692_v23, 1 }
  0xa8   : > { %v676_v48 = vadd.f32 %v675_v44, %v674_v19 }
  0xa9   : > { %v682_v49 = vadd.f32 %v681_v45, %v680_v42  ;;  %v688_v50 = vadd.f32 %v687_v46, %v686_v43  ;;  %v694_v4 = vadd.f32 %v693_v47, %v692_v23 }
  0xab   : > { %v699_v51 = vsel %vm580_vm9, %v682_v49, %v676_v48 }
  0xac   : > { %v700_v52 = vsel %vm582_vm10, %v688_v50, %v699_v51 }
  0xad   : > { %v701_v53 = vsel %vm584_vm11, %v694_v4, %v700_v52 }
  0xae   : > { %848 = vst [vmem:[%s1342_s26 + $0xc] sm:$0xf] %v701_v53 }
  0xaf   : > { %1013 = shalt.err (!%p1010_p9)
}
  0xb0   : > { %s1014_s20 = scalar_lea.hbm %s1390_s3, 256  ;;  %s1018_s5 = scalar_lea.hbm %s1444_s2, 512 }
  0xb1   : > { %p1015_p1 = scmp.ne.s32.totalorder %s1390_s3, %s1014_s20  ;;  %p1019_p5 = scmp.lt.u32.totalorder %s1390_s3, %s1444_s2 }
  0xb2   : > { %p1020_p13 = scmp.lt.u32.totalorder %s1018_s5, %s1014_s20  ;;  %p1022_p8 = scmp.lt.u32.totalorder %s1014_s20, %s1390_s3 }
  0xb3   : > { %p1016_p6 = pnand %p1015_p1, %p1464_p0 }
  0xb4   : > { %p1021_p3 = por %p1020_p13, %p1019_p5 }
  0xb5   : > { %p1017_p2 = pneg %p1016_p6 }
  0xb6   : > { %p1023_p11 = por %p1022_p8, %p1021_p3 }
  0xb8   : > { %p1024_p4 = pnand %p1023_p11, %p1017_p2 }
  0xba   : > { %1027 = shalt.err (!%p1024_p4)
}
  0xbb   : > { %s1094_s21 = smov 64   ;;  %s1095_s26 = smov 4  }
  0xbc   : > { %860 = dma.vmem_to_hbm [thread:$0]  (%p1464_p0), %s1384_s30, 256, %s1390_s3, %s706_s12, %s1094_s21, %s1094_s21, %s1095_s26  }
  0xbd PF: > { %s735_s27 = sand.u32 1, %s1066_s9   ;;  %p1465_p7 = scmp.ne.s32.totalorder %s1450_s24, 0 }
  0xbe   : > { %p1466_p10 = scmp.ge.s32.totalorder %s1086_s14, 2  ;;  %s736_s28 = scalar_lea.sflag [#allocation5], %s735_s27 }
  0xc0   : > { %p870_p12 = pnand %p1466_p10, %p1465_p7 }
  0xc2   : > { %1061 = dma.done.wait (!%p870_p12), %s736_s28, 256  }
  0xc3   : > { %1063 = vsyncadd (!%p870_p12), %s736_s28, 4294967040  ;;  %s21_s14 = sadd.s32 1, %s1086_s14   ;;  %s1467_s9 = smov %s1070_s10 }
  0xc4   : > { %p18_p9 = scmp.ge.s32.totalorder %s21_s14, 4   ;;  %s1468_s10 = smov %s1074_s11 }
  0xc5   : > { %s1469_s11 = smov %s1167_s23  ;;  %s1470_s12 = smov %s1082_s13 }
  0xc6   : > { %s1471_s13 = smov %s1473_s17  ;;  %20 = sbr.rel (!%p18_p9) target bundleno = 8 (0x8), region = 138 }
  0xcd   :  { %741 = vsyncpa [#allocation4], 1 }
  0xce   :  { %743 = vsyncpa [#allocation4 + $0x1], 1 }
  0xcf   :  { %744 = vsyncpa [#allocation7], 1 }
  0xd0   :  { %746 = vsyncpa [#allocation7 + $0x1], 1 }
  0xd1   :  { %747 = vsyncpa [#allocation5], 1 }
  0xd2   :  { %749 = vsyncpa [#allocation5 + $0x1], 1 }

</bundles_post_ra>
